<compile_context>
chip_gen: v7x
topology: tpu7x:2x2x1
jax: 0.10.0
libtpu: 0.0.40
codegen_flags: <defaults>
</compile_context>

<pallas_src>
import functools

import jax
import jax.numpy as jnp
from jax.experimental import pallas as pl
from jax.experimental.pallas import tpu as pltpu

D_IN = 4
D_H = 256
D_OUT = 2


def _round_up(n, m):
    return ((n + m - 1) // m) * m


def qnet_kernel(xt_ref, w1_ref, b1_ref, w2t_ref, b2t_ref, qt_ref, at_ref):
    # xt_ref : (D_IN, TB)   states, batch in lanes
    # w1_ref : (D_H, D_IN)  PyTorch (out, in) layout
    # b1_ref : (D_H, 1)
    # w2t_ref: (D_H, D_OUT) layer-2 weight, transposed once in the wrapper
    # b2t_ref: (D_OUT, 1)
    xt = xt_ref[...]

    # ---- Layer 1: K=4 contraction as 4 unrolled VPU outer-product FMAs -----
    # h[j, b] = b1[j] + sum_k w1[j, k] * x[b, k]; bias folded into first term.
    h = b1_ref[...] + w1_ref[:, 0:1] * xt[0:1, :]
    for k in range(1, D_IN):
        h = h + w1_ref[:, k:k + 1] * xt[k:k + 1, :]
    h = jnp.maximum(h, 0.0)                              # (D_H, TB)

    # ---- Layer 2: D_H -> 2 as sublane-axis reductions ----------------------
    # Per output: elementwise scale by the weight column, then reduce over the
    # 256 sublanes (vreg adds + one 8-wide sublane reduce).  No lane (XLU)
    # reductions, no concatenate: rows are stored directly, lane-dense.
    q0 = jnp.sum(h * w2t_ref[:, 0:1], axis=0, keepdims=True) + b2t_ref[0:1, :]
    q1 = jnp.sum(h * w2t_ref[:, 1:2], axis=0, keepdims=True) + b2t_ref[1:2, :]
    qt_ref[0:1, :] = q0.astype(qt_ref.dtype)
    qt_ref[1:2, :] = q1.astype(qt_ref.dtype)

    # ---- Fused greedy action (argmax over the 2 Q-values; ties -> 0) -------
    at_ref[...] = (q1 > q0).astype(jnp.int32)


@functools.partial(jax.jit, static_argnames=("block_b", "return_action"))
def qnet_forward(x, w1, b1, w2, b2, *, block_b=128, return_action=False):
    """Fused QNet forward.

    x: (B, 4) float32; params in PyTorch layouts: w1 (256, 4), b1 (256,),
    w2 (2, 256), b2 (2,).  Returns Q-values (B, 2) float32; with
    return_action=True also the greedy action (B,) int32 computed in-kernel.
    """
    B = x.shape[0]
    # Batch tile: multiple of 128 (lane-dense DMAs/stores); default 128 keeps
    # the f32 hidden tile at 32 vregs and gives >=2 grid steps for B > 128.
    tb = max(128, _round_up(min(block_b, _round_up(B, 128)), 128))
    b_pad = _round_up(B, tb)
    nb = b_pad // tb

    if b_pad != B:
        x = jnp.pad(x, ((0, b_pad - B), (0, 0)))
    xt = x.T                                   # (D_IN, b_pad), batch in lanes
    b1c = b1.reshape(D_H, 1)
    w2t = w2.T                                 # (D_H, D_OUT)
    b2c = b2.reshape(D_OUT, 1)

    flops = 2 * b_pad * (D_IN * D_H + D_H * D_OUT)
    bytes_accessed = 4 * (b_pad * D_IN + D_H * D_IN + D_H + D_H * D_OUT
                          + D_OUT + b_pad * D_OUT + b_pad)

    qt, at = pl.pallas_call(
        qnet_kernel,
        out_shape=(
            jax.ShapeDtypeStruct((D_OUT, b_pad), jnp.float32),  # Q^T
            jax.ShapeDtypeStruct((1, b_pad), jnp.int32),        # greedy action
        ),
        grid=(nb,),
        in_specs=[
            pl.BlockSpec((D_IN, tb), lambda i: (0, i)),     # x^T: batch-tiled
            pl.BlockSpec((D_H, D_IN), lambda i: (0, 0)),    # w1: VMEM-resident
            pl.BlockSpec((D_H, 1), lambda i: (0, 0)),       # b1: VMEM-resident
            pl.BlockSpec((D_H, D_OUT), lambda i: (0, 0)),   # w2^T: resident
            pl.BlockSpec((D_OUT, 1), lambda i: (0, 0)),     # b2: resident
        ],
        out_specs=(
            pl.BlockSpec((D_OUT, tb), lambda i: (0, i)),    # Q^T, lane-dense
            pl.BlockSpec((1, tb), lambda i: (0, i)),        # action, lane-dense
        ),
        compiler_params=pltpu.CompilerParams(
            dimension_semantics=("parallel",),              # shards batch tiles
        ),
        cost_estimate=pl.CostEstimate(
            flops=flops, transcendentals=0, bytes_accessed=bytes_accessed),
    )(xt, w1, b1c, w2t, b2c)

    q = qt[:, :B].T                                         # (B, 2)
    if return_action:
        return q, at[0, :B]
    return q


def init_params(key):
    """PyTorch nn.Linear default init (uniform +/- 1/sqrt(fan_in)),
    in PyTorch's native (out_features, in_features) layouts."""
    k1, k2, k3, k4 = jax.random.split(key, 4)
    bound1 = 1.0 / jnp.sqrt(D_IN)
    bound2 = 1.0 / jnp.sqrt(D_H)
    w1 = jax.random.uniform(k1, (D_H, D_IN), jnp.float32, -bound1, bound1)
    b1 = jax.random.uniform(k2, (D_H,), jnp.float32, -bound1, bound1)
    w2 = jax.random.uniform(k3, (D_OUT, D_H), jnp.float32, -bound2, bound2)
    b2 = jax.random.uniform(k4, (D_OUT,), jnp.float32, -bound2, bound2)
    return w1, b1, w2, b2


if __name__ == "__main__":
    key = jax.random.PRNGKey(0)
    k_param, k_x = jax.random.split(key)
    w1, b1, w2, b2 = init_params(k_param)

    B = 8  # small batch of CartPole states (state dim = 4)
    x = jax.random.normal(k_x, (B, D_IN), jnp.float32)

    q, action = qnet_forward(x, w1, b1, w2, b2, return_action=True)
    q = jax.block_until_ready(q)
    action = jax.block_until_ready(action)

    # Pure-JAX reference (PyTorch: relu(x @ W1.T + b1) @ W2.T + b2).
    ref_q = jnp.maximum(x @ w1.T + b1, 0.0) @ w2.T + b2
    ref_a = jnp.argmax(ref_q, axis=-1).astype(jnp.int32)

    assert q.shape == (B, D_OUT) and action.shape == (B,)
    assert jnp.allclose(q, ref_q, atol=1e-5, rtol=1e-5)
    assert jnp.array_equal(action, ref_a)

    print("KERNEL_OK")
</pallas_src>

<mosaic_0001>
module attributes {stable_mosaic.version = 11 : i64} {
  func.func @qnet_kernel(%arg0: i32, %arg1: memref<4x128xf32, #tpu.memory_space<vmem>>, %arg2: memref<256x4xf32, #tpu.memory_space<vmem>>, %arg3: memref<256x1xf32, #tpu.memory_space<vmem>>, %arg4: memref<256x2xf32, #tpu.memory_space<vmem>>, %arg5: memref<2x1xf32, #tpu.memory_space<vmem>>, %arg6: memref<2x128xf32, #tpu.memory_space<vmem>>, %arg7: memref<1x128xi32, #tpu.memory_space<vmem>>) attributes {dimension_semantics = [#tpu.dimension_semantics<parallel>], iteration_bounds = array<i64: 1>, scalar_prefetch = 0 : i64, scratch_operands = 0 : i64, tpu.core_type = #tpu.core_type<tc>, window_params = [{transform_indices = @transform_0, window_bounds = array<i64: 4, 128>}, {pipeline_mode = #tpu.pipeline_mode<synchronous>, transform_indices = @transform_1, window_bounds = array<i64: 256, 4>}, {pipeline_mode = #tpu.pipeline_mode<synchronous>, transform_indices = @transform_2, window_bounds = array<i64: 256, 1>}, {pipeline_mode = #tpu.pipeline_mode<synchronous>, transform_indices = @transform_3, window_bounds = array<i64: 256, 2>}, {pipeline_mode = #tpu.pipeline_mode<synchronous>, transform_indices = @transform_4, window_bounds = array<i64: 2, 1>}, {transform_indices = @transform_5, window_bounds = array<i64: 2, 128>}, {transform_indices = @transform_6, window_bounds = array<i64: 1, 128>}]} {
    %c0 = arith.constant 0 : index
    %c0_0 = arith.constant 0 : index
    %0 = vector.load %arg1[%c0, %c0_0] : memref<4x128xf32, #tpu.memory_space<vmem>>, vector<4x128xf32>
    %c0_1 = arith.constant 0 : index
    %c0_2 = arith.constant 0 : index
    %1 = vector.load %arg3[%c0_1, %c0_2] : memref<256x1xf32, #tpu.memory_space<vmem>>, vector<256x1xf32>
    %c0_3 = arith.constant 0 : index
    %c0_4 = arith.constant 0 : index
    %2 = vector.load %arg2[%c0_3, %c0_4] : memref<256x4xf32, #tpu.memory_space<vmem>>, vector<256x1xf32>
    %3 = vector.extract_strided_slice %0 {offsets = [0, 0], sizes = [1, 128], strides = [1, 1]} : vector<4x128xf32> to vector<1x128xf32>
    %4 = vector.broadcast %2 : vector<256x1xf32> to vector<256x128xf32>
    %5 = vector.broadcast %3 : vector<1x128xf32> to vector<256x128xf32>
    %6 = arith.mulf %4, %5 : vector<256x128xf32>
    %7 = vector.broadcast %1 : vector<256x1xf32> to vector<256x128xf32>
    %8 = arith.addf %7, %6 : vector<256x128xf32>
    %c0_5 = arith.constant 0 : index
    %c1 = arith.constant 1 : index
    %9 = vector.load %arg2[%c0_5, %c1] : memref<256x4xf32, #tpu.memory_space<vmem>>, vector<256x1xf32>
    %10 = vector.extract_strided_slice %0 {offsets = [1, 0], sizes = [1, 128], strides = [1, 1]} : vector<4x128xf32> to vector<1x128xf32>
    %11 = vector.broadcast %9 : vector<256x1xf32> to vector<256x128xf32>
    %12 = vector.broadcast %10 : vector<1x128xf32> to vector<256x128xf32>
    %13 = arith.mulf %11, %12 : vector<256x128xf32>
    %14 = arith.addf %8, %13 : vector<256x128xf32>
    %c0_6 = arith.constant 0 : index
    %c2 = arith.constant 2 : index
    %15 = vector.load %arg2[%c0_6, %c2] : memref<256x4xf32, #tpu.memory_space<vmem>>, vector<256x1xf32>
    %16 = vector.extract_strided_slice %0 {offsets = [2, 0], sizes = [1, 128], strides = [1, 1]} : vector<4x128xf32> to vector<1x128xf32>
    %17 = vector.broadcast %15 : vector<256x1xf32> to vector<256x128xf32>
    %18 = vector.broadcast %16 : vector<1x128xf32> to vector<256x128xf32>
    %19 = arith.mulf %17, %18 : vector<256x128xf32>
    %20 = arith.addf %14, %19 : vector<256x128xf32>
    %c0_7 = arith.constant 0 : index
    %c3 = arith.constant 3 : index
    %21 = vector.load %arg2[%c0_7, %c3] : memref<256x4xf32, #tpu.memory_space<vmem>>, vector<256x1xf32>
    %22 = vector.extract_strided_slice %0 {offsets = [3, 0], sizes = [1, 128], strides = [1, 1]} : vector<4x128xf32> to vector<1x128xf32>
    %23 = vector.broadcast %21 : vector<256x1xf32> to vector<256x128xf32>
    %24 = vector.broadcast %22 : vector<1x128xf32> to vector<256x128xf32>
    %25 = arith.mulf %23, %24 : vector<256x128xf32>
    %26 = arith.addf %20, %25 : vector<256x128xf32>
    %cst = arith.constant 0.000000e+00 : f32
    %27 = vector.broadcast %cst : f32 to vector<256x128xf32>
    %28 = arith.maximumf %26, %27 : vector<256x128xf32>
    %c0_8 = arith.constant 0 : index
    %c0_9 = arith.constant 0 : index
    %29 = vector.load %arg4[%c0_8, %c0_9] : memref<256x2xf32, #tpu.memory_space<vmem>>, vector<256x1xf32>
    %30 = vector.broadcast %29 : vector<256x1xf32> to vector<256x128xf32>
    %31 = arith.mulf %28, %30 : vector<256x128xf32>
    %cst_10 = arith.constant dense<0.000000e+00> : vector<128xf32>
    %32 = vector.multi_reduction <add>, %31, %cst_10 [0] : vector<256x128xf32> to vector<128xf32>
    %33 = vector.shape_cast %32 : vector<128xf32> to vector<1x128xf32>
    %c0_11 = arith.constant 0 : index
    %c0_12 = arith.constant 0 : index
    %34 = vector.load %arg5[%c0_11, %c0_12] : memref<2x1xf32, #tpu.memory_space<vmem>>, vector<1x1xf32>
    %35 = vector.broadcast %34 : vector<1x1xf32> to vector<1x128xf32>
    %36 = arith.addf %33, %35 : vector<1x128xf32>
    %c0_13 = arith.constant 0 : index
    %c1_14 = arith.constant 1 : index
    %37 = vector.load %arg4[%c0_13, %c1_14] : memref<256x2xf32, #tpu.memory_space<vmem>>, vector<256x1xf32>
    %38 = vector.broadcast %37 : vector<256x1xf32> to vector<256x128xf32>
    %39 = arith.mulf %28, %38 : vector<256x128xf32>
    %cst_15 = arith.constant dense<0.000000e+00> : vector<128xf32>
    %40 = vector.multi_reduction <add>, %39, %cst_15 [0] : vector<256x128xf32> to vector<128xf32>
    %41 = vector.shape_cast %40 : vector<128xf32> to vector<1x128xf32>
    %c1_16 = arith.constant 1 : index
    %c0_17 = arith.constant 0 : index
    %42 = vector.load %arg5[%c1_16, %c0_17] : memref<2x1xf32, #tpu.memory_space<vmem>>, vector<1x1xf32>
    %43 = vector.broadcast %42 : vector<1x1xf32> to vector<1x128xf32>
    %44 = arith.addf %41, %43 : vector<1x128xf32>
    %c0_18 = arith.constant 0 : index
    %c0_19 = arith.constant 0 : index
    %45 = vector.load %arg6[%c0_18, %c0_19] : memref<2x128xf32, #tpu.memory_space<vmem>>, vector<1x128xf32>
    tpu.vector_store %arg6[%c0_18, %c0_19], %36 {strides = array<i32>} : memref<2x128xf32, #tpu.memory_space<vmem>>, vector<1x128xf32>,
    %c1_20 = arith.constant 1 : index
    %c0_21 = arith.constant 0 : index
    %46 = vector.load %arg6[%c1_20, %c0_21] : memref<2x128xf32, #tpu.memory_space<vmem>>, vector<1x128xf32>
    tpu.vector_store %arg6[%c1_20, %c0_21], %44 {strides = array<i32>} : memref<2x128xf32, #tpu.memory_space<vmem>>, vector<1x128xf32>,
    %47 = arith.cmpf ogt, %44, %36 : vector<1x128xf32>
    %48 = arith.extui %47 : vector<1x128xi1> to vector<1x128xi32>
    %c0_22 = arith.constant 0 : index
    %c0_23 = arith.constant 0 : index
    %49 = vector.load %arg7[%c0_22, %c0_23] : memref<1x128xi32, #tpu.memory_space<vmem>>, vector<1x128xi32>
    tpu.vector_store %arg7[%c0_22, %c0_23], %48 {strides = array<i32>} : memref<1x128xi32, #tpu.memory_space<vmem>>, vector<1x128xi32>,
    return
  }
  func.func @transform_0(%arg0: i32) -> (i32, i32) {
    %c0_i32 = arith.constant 0 : i32
    %c0_i32_0 = arith.constant 0 : i32
    return %c0_i32, %arg0 : i32, i32
  }
  func.func @transform_1(%arg0: i32) -> (i32, i32) {
    %c0_i32 = arith.constant 0 : i32
    %c0_i32_0 = arith.constant 0 : i32
    %c0_i32_1 = arith.constant 0 : i32
    return %c0_i32, %c0_i32_0 : i32, i32
  }
  func.func @transform_2(%arg0: i32) -> (i32, i32) {
    %c0_i32 = arith.constant 0 : i32
    %c0_i32_0 = arith.constant 0 : i32
    %c0_i32_1 = arith.constant 0 : i32
    return %c0_i32, %c0_i32_0 : i32, i32
  }
  func.func @transform_3(%arg0: i32) -> (i32, i32) {
    %c0_i32 = arith.constant 0 : i32
    %c0_i32_0 = arith.constant 0 : i32
    %c0_i32_1 = arith.constant 0 : i32
    return %c0_i32, %c0_i32_0 : i32, i32
  }
  func.func @transform_4(%arg0: i32) -> (i32, i32) {
    %c0_i32 = arith.constant 0 : i32
    %c0_i32_0 = arith.constant 0 : i32
    %c0_i32_1 = arith.constant 0 : i32
    return %c0_i32, %c0_i32_0 : i32, i32
  }
  func.func @transform_5(%arg0: i32) -> (i32, i32) {
    %c0_i32 = arith.constant 0 : i32
    %c0_i32_0 = arith.constant 0 : i32
    return %c0_i32, %arg0 : i32, i32
  }
  func.func @transform_6(%arg0: i32) -> (i32, i32) {
    %c0_i32 = arith.constant 0 : i32
    %c0_i32_0 = arith.constant 0 : i32
    return %c0_i32, %arg0 : i32, i32
  }
}

</mosaic_0001>

<bundles_post_ra>
// kernel: qnet_forward.1
= control target key start
LH: loop header
LB: loop body
LE: loop exit
PB: predicated region body
PF: predicated region fallthrough
CT: control target
= control target key end

     0   :  { %v3087_v0 = vmov 2   ;;  %v3082_v1 = vmov 0   ;;  %v3086_v34 = vmov 3   ;;  %v3084_v53 = vmov 1   ;;  %s3075_s1 = inlined_call_operand.vmem [shape: f32[256,4], index: 1, kind: input, shape index: {}]   ;;  %s3076_s2 = inlined_call_operand.vmem [shape: f32[256,1], index: 2, kind: input, shape index: {}]   ;;  %s3077_s3 = inlined_call_operand.vmem [shape: f32[256,2], index: 3, kind: input, shape index: {}]   ;;  %s3078_s0 = inlined_call_operand.vmem [shape: f32[4,128], index: 0, kind: input, shape index: {}]   ;;  %s3079_s4 = inlined_call_operand.vmem [shape: f32[2,1], index: 4, kind: input, shape index: {}]   ;;  %s3080_s5 = inlined_call_operand.vmem [shape: f32[2,128], index: 5, kind: output, shape index: {0}]   ;;  %s3081_s6 = inlined_call_operand.vmem [shape: s32[1,128], index: 6, kind: output, shape index: {1}]  }
   0x1   :  { %1587 = vset.pattern.permute.xlu0 %v3087_v0  ;;  %1584 = vset.pattern.permute.xlu1 %v3082_v1  ;;  %v1640_v2 = vld [vmem:[%s3075_s1 + $0x10] sm:$0xff]  ;;  %v1645_v3 = vld [vmem:[%s3075_s1 + $0x8] sm:$0xff]  ;;  %v1652_v4 = vld [vmem:[%s3075_s1 + $0x18] sm:$0xff] }
   0x2   :  { %99 = vperm.xlu1 %1584, %v1640_v2   ;;  %676 = vperm.xlu0 %1587, %v1645_v3   ;;  %v1657_v5 = vld [vmem:[%s3075_s1 + $0x20] sm:$0xff]  ;;  %v1664_v6 = vld [vmem:[%s3075_s1 + $0x28] sm:$0xff]  ;;  %v1669_v7 = vld [vmem:[%s3075_s1 + $0x30] sm:$0xff] }
   0x3   :  { %v1676_v8 = vld [vmem:[%s3075_s1 + $0x38] sm:$0xff]  ;;  %v1681_v9 = vld [vmem:[%s3075_s1 + $0x40] sm:$0xff]  ;;  %v1688_v10 = vld [vmem:[%s3075_s1 + $0x48] sm:$0xff] }
   0x4   :  { %v1693_v11 = vld [vmem:[%s3075_s1 + $0x50] sm:$0xff]  ;;  %v1700_v12 = vld [vmem:[%s3075_s1 + $0x58] sm:$0xff]  ;;  %v1705_v13 = vld [vmem:[%s3075_s1 + $0x60] sm:$0xff] }
   0x5   :  { %v1712_v14 = vld [vmem:[%s3075_s1 + $0x68] sm:$0xff]  ;;  %v1717_v15 = vld [vmem:[%s3075_s1 + $0x70] sm:$0xff]  ;;  %v1724_v16 = vld [vmem:[%s3075_s1 + $0x78] sm:$0xff] }
   0x6   :  { %104 = vperm.xlu1 %1584, %v1652_v4   ;;  %688 = vperm.xlu0 %1587, %v1657_v5   ;;  %v1729_v17 = vld [vmem:[%s3075_s1 + $0x80] sm:$0xff]  ;;  %v1736_v18 = vld [vmem:[%s3075_s1 + $0x88] sm:$0xff]  ;;  %v1741_v19 = vld [vmem:[%s3075_s1 + $0x90] sm:$0xff] }
   0x7   :  { %v1748_v20 = vld [vmem:[%s3075_s1 + $0x98] sm:$0xff]  ;;  %v1753_v21 = vld [vmem:[%s3075_s1 + $0xa0] sm:$0xff]  ;;  %v1760_v22 = vld [vmem:[%s3075_s1 + $0xa8] sm:$0xff] }
   0x8   :  { %v1765_v23 = vld [vmem:[%s3075_s1 + $0xb0] sm:$0xff]  ;;  %v1772_v24 = vld [vmem:[%s3075_s1 + $0xb8] sm:$0xff]  ;;  %v1777_v25 = vld [vmem:[%s3075_s1 + $0xc0] sm:$0xff] }
   0x9   :  { %v1784_v26 = vld [vmem:[%s3075_s1 + $0xc8] sm:$0xff]  ;;  %v1789_v27 = vld [vmem:[%s3075_s1 + $0xd0] sm:$0xff]  ;;  %v1796_v28 = vld [vmem:[%s3075_s1 + $0xd8] sm:$0xff] }
   0xa   :  { %114 = vperm.xlu1 %1584, %v1664_v6   ;;  %696 = vperm.xlu0 %1587, %v1669_v7   ;;  %v1801_v29 = vld [vmem:[%s3075_s1 + $0xe0] sm:$0xff]  ;;  %v1808_v30 = vld [vmem:[%s3075_s1 + $0xe8] sm:$0xff]  ;;  %v1813_v31 = vld [vmem:[%s3075_s1 + $0xf0] sm:$0xff] }
   0xb   :  { %v1820_v32 = vld [vmem:[%s3075_s1 + $0xf8] sm:$0xff]  ;;  %v1825_v33 = vld [vmem:[%s3075_s1] sm:$0xff]  ;;  %v24_v35 = vld [vmem:[%s3076_s2 + $0x8] sm:$0xff] }
   0xc   :  { %v26_v36 = vld [vmem:[%s3076_s2 + $0x18] sm:$0xff]  ;;  %v28_v37 = vld [vmem:[%s3076_s2 + $0x28] sm:$0xff]  ;;  %v23_v0 = vld [vmem:[%s3076_s2] sm:$0xff] }
   0xd   :  { %v30_v38 = vld [vmem:[%s3076_s2 + $0x38] sm:$0xff]  ;;  %v32_v39 = vld [vmem:[%s3076_s2 + $0x48] sm:$0xff] }
   0xe   :  { %124 = vperm.xlu1 %1584, %v1676_v8   ;;  %704 = vperm.xlu0 %1587, %v1681_v9   ;;  %v34_v40 = vld [vmem:[%s3076_s2 + $0x58] sm:$0xff]  ;;  %v36_v41 = vld [vmem:[%s3076_s2 + $0x68] sm:$0xff] }
   0xf   :  { %v38_v42 = vld [vmem:[%s3076_s2 + $0x78] sm:$0xff]  ;;  %v40_v43 = vld [vmem:[%s3076_s2 + $0x88] sm:$0xff] }
  0x10   :  { %v42_v44 = vld [vmem:[%s3076_s2 + $0x98] sm:$0xff]  ;;  %v44_v45 = vld [vmem:[%s3076_s2 + $0xa8] sm:$0xff] }
  0x11   :  { %v46_v46 = vld [vmem:[%s3076_s2 + $0xb8] sm:$0xff]  ;;  %v48_v47 = vld [vmem:[%s3076_s2 + $0xc8] sm:$0xff] }
  0x12   :  { %134 = vperm.xlu1 %1584, %v1688_v10   ;;  %712 = vperm.xlu0 %1587, %v1693_v11   ;;  %v50_v48 = vld [vmem:[%s3076_s2 + $0xd8] sm:$0xff]  ;;  %v52_v49 = vld [vmem:[%s3076_s2 + $0xe8] sm:$0xff] }
  0x13   :  { %v54_v50 = vld [vmem:[%s3076_s2 + $0xf8] sm:$0xff] }
  0x16   :  { %144 = vperm.xlu1 %1584, %v1700_v12   ;;  %720 = vperm.xlu0 %1587, %v1705_v13  }
  0x1a   :  { %154 = vperm.xlu1 %1584, %v1712_v14   ;;  %728 = vperm.xlu0 %1587, %v1717_v15  }
  0x1e   :  { %164 = vperm.xlu1 %1584, %v1724_v16   ;;  %736 = vperm.xlu0 %1587, %v1729_v17  }
  0x22   :  { %174 = vperm.xlu1 %1584, %v1736_v18   ;;  %744 = vperm.xlu0 %1587, %v1741_v19  }
  0x26   :  { %184 = vperm.xlu1 %1584, %v1748_v20   ;;  %752 = vperm.xlu0 %1587, %v1753_v21  }
  0x2a   :  { %194 = vperm.xlu1 %1584, %v1760_v22   ;;  %760 = vperm.xlu0 %1587, %v1765_v23  }
  0x2e   :  { %204 = vperm.xlu1 %1584, %v1772_v24   ;;  %768 = vperm.xlu0 %1587, %v1777_v25  }
  0x32   :  { %214 = vperm.xlu1 %1584, %v1784_v26   ;;  %776 = vperm.xlu0 %1587, %v1789_v27  }
  0x36   :  { %224 = vperm.xlu1 %1584, %v1796_v28   ;;  %784 = vperm.xlu0 %1587, %v1801_v29  }
  0x3a   :  { %234 = vperm.xlu1 %1584, %v1808_v30   ;;  %792 = vperm.xlu0 %1587, %v1813_v31  }
  0x3e   :  { %244 = vperm.xlu1 %1584, %v1820_v32   ;;  %1588 = vset.pattern.permute.xlu0 %v3086_v34 }
  0x3f   :  { %868 = vperm.xlu0 %1588, %v1825_v33  }
  0x42   :  { %290 = vperm.xlu1 %1584, %v24_v35  }
  0x43   :  { %880 = vperm.xlu0 %1588, %v1652_v4  }
  0x46   :  { %300 = vperm.xlu1 %1584, %v26_v36  }
  0x47   :  { %888 = vperm.xlu0 %1588, %v1664_v6  }
  0x4a   :  { %310 = vperm.xlu1 %1584, %v28_v37  }
  0x4b   :  { %896 = vperm.xlu0 %1588, %v1676_v8  }
  0x4e   :  { %320 = vperm.xlu1 %1584, %v30_v38  }
  0x4f   :  { %904 = vperm.xlu0 %1588, %v1688_v10  }
  0x52   :  { %330 = vperm.xlu1 %1584, %v32_v39  }
  0x53   :  { %912 = vperm.xlu0 %1588, %v1700_v12  }
  0x56   :  { %340 = vperm.xlu1 %1584, %v34_v40  }
  0x57   :  { %920 = vperm.xlu0 %1588, %v1712_v14  }
  0x5a   :  { %350 = vperm.xlu1 %1584, %v36_v41  }
  0x5b   :  { %928 = vperm.xlu0 %1588, %v1724_v16  }
  0x5e   :  { %360 = vperm.xlu1 %1584, %v38_v42  }
  0x5f   :  { %936 = vperm.xlu0 %1588, %v1736_v18  }
  0x62   :  { %370 = vperm.xlu1 %1584, %v40_v43  }
  0x63   :  { %944 = vperm.xlu0 %1588, %v1748_v20  }
  0x66   :  { %380 = vperm.xlu1 %1584, %v42_v44  }
  0x67   :  { %952 = vperm.xlu0 %1588, %v1760_v22  }
  0x6a   :  { %390 = vperm.xlu1 %1584, %v44_v45  }
  0x6b   :  { %960 = vperm.xlu0 %1588, %v1772_v24  }
  0x6e   :  { %400 = vperm.xlu1 %1584, %v46_v46  }
  0x6f   :  { %968 = vperm.xlu0 %1588, %v1784_v26  }
  0x72   :  { %410 = vperm.xlu1 %1584, %v48_v47  }
  0x73   :  { %976 = vperm.xlu0 %1588, %v1796_v28  }
  0x76   :  { %420 = vperm.xlu1 %1584, %v50_v48  }
  0x77   :  { %984 = vperm.xlu0 %1588, %v1808_v30  }
  0x7a   :  { %430 = vperm.xlu1 %1584, %v52_v49  }
  0x7b   :  { %992 = vperm.xlu0 %1588, %v1820_v32  }
  0x7e   :  { %440 = vperm.xlu1 %1584, %v54_v50  }
  0x7f   :  { %1590 = vset.pattern.permute.xlu0 %v3082_v1 }
  0x80   :  { %89 = vperm.xlu0 %1590, %v1825_v33  }
  0x81   :  { %v1895_v51 = vpop.permute.xlu1 %99  ;;  %v1897_v52 = vpop.permute.xlu0 %676 }
  0x82   :  { %3123 = vst [vmem:[#allocation2_spill] sm:$0xff] %v1895_v51  ;;  %3124 = vst [vmem:[#allocation3_spill] sm:$0xff] %v1897_v52  ;;  %1585 = vset.pattern.permute.xlu1 %v3084_v53 }
  0x83   :  { %480 = vperm.xlu1 %1585, %v1645_v3  }
  0x84   :  { %94 = vperm.xlu0 %1590, %v1645_v3  }
  0x85   :  { %v1902_v54 = vpop.permute.xlu1 %104  ;;  %v1904_v55 = vpop.permute.xlu0 %688 }
  0x86   :  { %3125 = vst [vmem:[#allocation4_spill] sm:$0xff] %v1902_v54  ;;  %v2207_v54 = vld [vmem:[%s3077_s3 + $0x90] sm:$0xff] }
  0x87   :  { %484 = vperm.xlu1 %1585, %v1640_v2   ;;  %3186 = vst [vmem:[#allocation63_spill] sm:$0xff] %v2207_v54 }
  0x88   :  { %109 = vperm.xlu0 %1590, %v1657_v5  }
  0x89   :  { %v1908_v56 = vpop.permute.xlu1 %114  ;;  %v1910_v57 = vpop.permute.xlu0 %696 }
  0x8a   :  { %3126 = vst [vmem:[#allocation5_spill] sm:$0xff] %v1908_v56 }
  0x8b   :  { %492 = vperm.xlu1 %1585, %v1657_v5  }
  0x8c   :  { %119 = vperm.xlu0 %1590, %v1669_v7  }
  0x8d   :  { %v1914_v58 = vpop.permute.xlu1 %124  ;;  %v1916_v59 = vpop.permute.xlu0 %704 }
  0x8e   :  { %3127 = vst [vmem:[#allocation6_spill] sm:$0xff] %v1914_v58  ;;  %v2152_v58 = vld [vmem:[%s3077_s3 + $0x40] sm:$0xff] }
  0x8f   :  { %500 = vperm.xlu1 %1585, %v1669_v7  }
  0x90   :  { %129 = vperm.xlu0 %1590, %v1681_v9  }
  0x91   :  { %v1920_v60 = vpop.permute.xlu1 %134  ;;  %v1922_v61 = vpop.permute.xlu0 %712 }
  0x92   :  { %3128 = vst [vmem:[#allocation7_spill] sm:$0xff] %v1920_v60 }
  0x93   :  { %508 = vperm.xlu1 %1585, %v1681_v9  }
  0x94   :  { %139 = vperm.xlu0 %1590, %v1693_v11  }
  0x95   :  { %v1926_v62 = vpop.permute.xlu1 %144  ;;  %v1928_v63 = vpop.permute.xlu0 %720 }
  0x96   :  { %3129 = vst [vmem:[#allocation8_spill] sm:$0xff] %v1926_v62 }
  0x97   :  { %516 = vperm.xlu1 %1585, %v1693_v11  }
  0x98   :  { %149 = vperm.xlu0 %1590, %v1705_v13  }
  0x99   :  { %v1932_v35 = vpop.permute.xlu1 %154  ;;  %v1934_v36 = vpop.permute.xlu0 %728 }
  0x9a   :  { %3130 = vst [vmem:[#allocation9_spill] sm:$0xff] %v1932_v35  ;;  %v31_v35 = vld [vmem:[%s3076_s2 + $0x40] sm:$0xff] }
  0x9b   :  { %524 = vperm.xlu1 %1585, %v1705_v13  }
  0x9c   :  { %159 = vperm.xlu0 %1590, %v1717_v15  }
  0x9d   :  { %v1938_v37 = vpop.permute.xlu1 %164  ;;  %v1940_v38 = vpop.permute.xlu0 %736 }
  0x9e   :  { %3131 = vst [vmem:[#allocation10_spill] sm:$0xff] %v1938_v37 }
  0x9f   :  { %532 = vperm.xlu1 %1585, %v1717_v15  }
  0xa0   :  { %169 = vperm.xlu0 %1590, %v1729_v17  }
  0xa1   :  { %v1944_v39 = vpop.permute.xlu1 %174  ;;  %v1946_v40 = vpop.permute.xlu0 %744 }
  0xa2   :  { %3132 = vst [vmem:[#allocation11_spill] sm:$0xff] %v1944_v39  ;;  %3133 = vst [vmem:[#allocation12_spill] sm:$0xff] %v1946_v40 }
  0xa3   :  { %540 = vperm.xlu1 %1585, %v1729_v17  }
  0xa4   :  { %179 = vperm.xlu0 %1590, %v1741_v19  }
  0xa5   :  { %v1950_v41 = vpop.permute.xlu1 %184  ;;  %v1952_v42 = vpop.permute.xlu0 %752 }
  0xa6   :  { %3134 = vst [vmem:[#allocation13_spill] sm:$0xff] %v1950_v41  ;;  %3135 = vst [vmem:[#allocation14_spill] sm:$0xff] %v1952_v42  ;;  %v27_v41 = vld [vmem:[%s3076_s2 + $0x20] sm:$0xff] }
  0xa7   :  { %548 = vperm.xlu1 %1585, %v1741_v19  }
  0xa8   :  { %189 = vperm.xlu0 %1590, %v1753_v21  }
  0xa9   :  { %v1956_v43 = vpop.permute.xlu1 %194  ;;  %v1958_v44 = vpop.permute.xlu0 %760 }
  0xaa   :  { %3136 = vst [vmem:[#allocation15_spill] sm:$0xff] %v1956_v43  ;;  %3137 = vst [vmem:[#allocation16_spill] sm:$0xff] %v1958_v44  ;;  %v3150_v43 = vmov 2   ;;  %v2251_v44 = vld [vmem:[%s3077_s3 + $0xd0] sm:$0xff] }
  0xab   :  { %556 = vperm.xlu1 %1585, %v1753_v21   ;;  %3192 = vst [vmem:[#allocation69_spill] sm:$0xff] %v2251_v44 }
  0xac   :  { %199 = vperm.xlu0 %1590, %v1765_v23  }
  0xad   :  { %v1962_v45 = vpop.permute.xlu1 %204  ;;  %v1964_v46 = vpop.permute.xlu0 %768 }
  0xae   :  { %3138 = vst [vmem:[#allocation17_spill] sm:$0xff] %v1962_v45  ;;  %3139 = vst [vmem:[#allocation18_spill] sm:$0xff] %v1964_v46  ;;  %v2229_v46 = vld [vmem:[%s3077_s3 + $0xb0] sm:$0xff] }
  0xaf   :  { %564 = vperm.xlu1 %1585, %v1765_v23   ;;  %3188 = vst [vmem:[#allocation65_spill] sm:$0xff] %v2229_v46 }
  0xb0   :  { %209 = vperm.xlu0 %1590, %v1777_v25  }
  0xb1   :  { %v1968_v47 = vpop.permute.xlu1 %214  ;;  %v1970_v48 = vpop.permute.xlu0 %776 }
  0xb2   :  { %3140 = vst [vmem:[#allocation19_spill] sm:$0xff] %v1968_v47  ;;  %3141 = vst [vmem:[#allocation20_spill] sm:$0xff] %v1970_v48 }
  0xb3   :  { %572 = vperm.xlu1 %1585, %v1777_v25  }
  0xb4   :  { %219 = vperm.xlu0 %1590, %v1789_v27  }
  0xb5   :  { %v1974_v49 = vpop.permute.xlu1 %224  ;;  %v1976_v50 = vpop.permute.xlu0 %784 }
  0xb6   :  { %3142 = vst [vmem:[#allocation21_spill] sm:$0xff] %v1974_v49  ;;  %3143 = vst [vmem:[#allocation22_spill] sm:$0xff] %v1976_v50 }
  0xb7   :  { %580 = vperm.xlu1 %1585, %v1789_v27  }
  0xb8   :  { %229 = vperm.xlu0 %1590, %v1801_v29  }
  0xb9   :  { %v1980_v1 = vpop.permute.xlu1 %234  ;;  %v1982_v53 = vpop.permute.xlu0 %792 }
  0xba   :  { %3144 = vst [vmem:[#allocation23_spill] sm:$0xff] %v1980_v1  ;;  %3145 = vst [vmem:[#allocation24_spill] sm:$0xff] %v1982_v53  ;;  %v25_v1 = vld [vmem:[%s3076_s2 + $0x10] sm:$0xff]  ;;  %v2174_v53 = vld [vmem:[%s3077_s3 + $0x60] sm:$0xff] }
  0xbb   :  { %588 = vperm.xlu1 %1585, %v1801_v29  }
  0xbc   :  { %239 = vperm.xlu0 %1590, %v1813_v31  }
  0xbd   :  { %v1986_v34 = vpop.permute.xlu1 %244 }
  0xbe   :  { %3146 = vst [vmem:[#allocation25_spill] sm:$0xff] %v1986_v34  ;;  %v1991_v49 = vpop.permute.xlu0 %868 }
  0xbf   :  { %3147 = vst [vmem:[#allocation26_spill] sm:$0xff] %v1991_v49  ;;  %596 = vperm.xlu1 %1585, %v1813_v31   ;;  %v2163_v49 = vld [vmem:[%s3077_s3 + $0x50] sm:$0xff] }
  0xc0   :  { %285 = vperm.xlu0 %1590, %v23_v0  }
  0xc1   :  { %v1994_v47 = vpop.permute.xlu1 %290 }
  0xc2   :  { %3148 = vst [vmem:[#allocation27_spill] sm:$0xff] %v1994_v47  ;;  %v1999_v45 = vpop.permute.xlu0 %880 }
  0xc3   :  { %3149 = vst [vmem:[#allocation28_spill] sm:$0xff] %v1999_v45  ;;  %1586 = vset.pattern.permute.xlu1 %v3150_v43  ;;  %v29_v43 = vld [vmem:[%s3076_s2 + $0x30] sm:$0xff]  ;;  %v3184_v45 = vmov 3  }
  0xc4   :  { %295 = vperm.xlu0 %1590, %v25_v1   ;;  %672 = vperm.xlu1 %1586, %v1825_v33  }
  0xc5   :  { %v2003_v34 = vpop.permute.xlu1 %300 }
  0xc6   :  { %3151 = vst [vmem:[#allocation29_spill] sm:$0xff] %v2003_v34  ;;  %v2008_v0 = vpop.permute.xlu0 %888  ;;  %v2185_v34 = vld [vmem:[%s3077_s3 + $0x70] sm:$0xff] }
  0xc7   :  { %3152 = vst [vmem:[#allocation30_spill] sm:$0xff] %v2008_v0 }
  0xc8   :  { %305 = vperm.xlu0 %1590, %v27_v41   ;;  %680 = vperm.xlu1 %1586, %v1640_v2  }
  0xc9   :  { %v2011_v39 = vpop.permute.xlu1 %310 }
  0xca   :  { %3153 = vst [vmem:[#allocation31_spill] sm:$0xff] %v2011_v39  ;;  %v2016_v1 = vpop.permute.xlu0 %896 }
  0xcb   :  { %3154 = vst [vmem:[#allocation32_spill] sm:$0xff] %v2016_v1  ;;  %v33_v1 = vld [vmem:[%s3076_s2 + $0x50] sm:$0xff] }
  0xcc   :  { %315 = vperm.xlu0 %1590, %v29_v43   ;;  %684 = vperm.xlu1 %1586, %v1652_v4  }
  0xcd   :  { %v2019_v37 = vpop.permute.xlu1 %320 }
  0xce   :  { %3155 = vst [vmem:[#allocation33_spill] sm:$0xff] %v2019_v37  ;;  %v2024_v41 = vpop.permute.xlu0 %904 }
  0xcf   :  { %3156 = vst [vmem:[#allocation34_spill] sm:$0xff] %v2024_v41  ;;  %v35_v41 = vld [vmem:[%s3076_s2 + $0x60] sm:$0xff] }
  0xd0   :  { %325 = vperm.xlu0 %1590, %v31_v35   ;;  %692 = vperm.xlu1 %1586, %v1664_v6  }
  0xd1   :  { %v2027_v62 = vpop.permute.xlu1 %330 }
  0xd2   :  { %3157 = vst [vmem:[#allocation35_spill] sm:$0xff] %v2027_v62  ;;  %v2032_v43 = vpop.permute.xlu0 %912 }
  0xd3   :  { %3158 = vst [vmem:[#allocation36_spill] sm:$0xff] %v2032_v43  ;;  %v37_v43 = vld [vmem:[%s3076_s2 + $0x70] sm:$0xff] }
  0xd4   :  { %335 = vperm.xlu0 %1590, %v33_v1   ;;  %700 = vperm.xlu1 %1586, %v1676_v8  }
  0xd5   :  { %v2035_v0 = vpop.permute.xlu1 %340 }
  0xd6   :  { %3159 = vst [vmem:[#allocation37_spill] sm:$0xff] %v2035_v0  ;;  %v2040_v35 = vpop.permute.xlu0 %920 }
  0xd7   :  { %3160 = vst [vmem:[#allocation38_spill] sm:$0xff] %v2040_v35  ;;  %v39_v35 = vld [vmem:[%s3076_s2 + $0x80] sm:$0xff] }
  0xd8   :  { %345 = vperm.xlu0 %1590, %v35_v41   ;;  %708 = vperm.xlu1 %1586, %v1688_v10  }
  0xd9   :  { %v2043_v62 = vpop.permute.xlu1 %350 }
  0xda   :  { %3161 = vst [vmem:[#allocation39_spill] sm:$0xff] %v2043_v62  ;;  %v2048_v1 = vpop.permute.xlu0 %928 }
  0xdb   :  { %3162 = vst [vmem:[#allocation40_spill] sm:$0xff] %v2048_v1  ;;  %v41_v1 = vld [vmem:[%s3076_s2 + $0x90] sm:$0xff] }
  0xdc   :  { %355 = vperm.xlu0 %1590, %v37_v43   ;;  %716 = vperm.xlu1 %1586, %v1700_v12  }
  0xdd   :  { %v2051_v0 = vpop.permute.xlu1 %360 }
  0xde   :  { %3163 = vst [vmem:[#allocation41_spill] sm:$0xff] %v2051_v0  ;;  %v2056_v41 = vpop.permute.xlu0 %936 }
  0xdf   :  { %3164 = vst [vmem:[#allocation42_spill] sm:$0xff] %v2056_v41  ;;  %v43_v41 = vld [vmem:[%s3076_s2 + $0xa0] sm:$0xff] }
  0xe0   :  { %365 = vperm.xlu0 %1590, %v39_v35   ;;  %724 = vperm.xlu1 %1586, %v1712_v14  }
  0xe1   :  { %v2059_v62 = vpop.permute.xlu1 %370 }
  0xe2   :  { %3165 = vst [vmem:[#allocation43_spill] sm:$0xff] %v2059_v62  ;;  %v2064_v43 = vpop.permute.xlu0 %944 }
  0xe3   :  { %3166 = vst [vmem:[#allocation44_spill] sm:$0xff] %v2064_v43  ;;  %v45_v43 = vld [vmem:[%s3076_s2 + $0xb0] sm:$0xff] }
  0xe4   :  { %375 = vperm.xlu0 %1590, %v41_v1   ;;  %732 = vperm.xlu1 %1586, %v1724_v16  }
  0xe5   :  { %v2067_v0 = vpop.permute.xlu1 %380 }
  0xe6   :  { %3167 = vst [vmem:[#allocation45_spill] sm:$0xff] %v2067_v0  ;;  %v2072_v35 = vpop.permute.xlu0 %952 }
  0xe7   :  { %3168 = vst [vmem:[#allocation46_spill] sm:$0xff] %v2072_v35  ;;  %v47_v35 = vld [vmem:[%s3076_s2 + $0xc0] sm:$0xff] }
  0xe8   :  { %385 = vperm.xlu0 %1590, %v43_v41   ;;  %740 = vperm.xlu1 %1586, %v1736_v18  }
  0xe9   :  { %v2075_v62 = vpop.permute.xlu1 %390 }
  0xea   :  { %3169 = vst [vmem:[#allocation47_spill] sm:$0xff] %v2075_v62  ;;  %v2080_v1 = vpop.permute.xlu0 %960 }
  0xeb   :  { %3170 = vst [vmem:[#allocation48_spill] sm:$0xff] %v2080_v1  ;;  %v49_v1 = vld [vmem:[%s3076_s2 + $0xd0] sm:$0xff] }
  0xec   :  { %395 = vperm.xlu0 %1590, %v45_v43   ;;  %748 = vperm.xlu1 %1586, %v1748_v20  }
  0xed   :  { %v2083_v0 = vpop.permute.xlu1 %400 }
  0xee   :  { %3171 = vst [vmem:[#allocation49_spill] sm:$0xff] %v2083_v0  ;;  %v2088_v41 = vpop.permute.xlu0 %968 }
  0xef   :  { %3172 = vst [vmem:[#allocation50_spill] sm:$0xff] %v2088_v41  ;;  %v51_v41 = vld [vmem:[%s3076_s2 + $0xe0] sm:$0xff] }
  0xf0   :  { %405 = vperm.xlu0 %1590, %v47_v35   ;;  %756 = vperm.xlu1 %1586, %v1760_v22  }
  0xf1   :  { %v2091_v62 = vpop.permute.xlu1 %410 }
  0xf2   :  { %3173 = vst [vmem:[#allocation51_spill] sm:$0xff] %v2091_v62  ;;  %v2096_v43 = vpop.permute.xlu0 %976 }
  0xf3   :  { %3174 = vst [vmem:[#allocation52_spill] sm:$0xff] %v2096_v43  ;;  %v53_v43 = vld [vmem:[%s3076_s2 + $0xf0] sm:$0xff] }
  0xf4   :  { %415 = vperm.xlu0 %1590, %v49_v1   ;;  %764 = vperm.xlu1 %1586, %v1772_v24  }
  0xf5   :  { %v2099_v0 = vpop.permute.xlu1 %420 }
  0xf6   :  { %3175 = vst [vmem:[#allocation53_spill] sm:$0xff] %v2099_v0  ;;  %v2104_v35 = vpop.permute.xlu0 %984 }
  0xf7   :  { %3176 = vst [vmem:[#allocation54_spill] sm:$0xff] %v2104_v35  ;;  %v2120_v35 = vld [vmem:[%s3077_s3 + $0x8] sm:$0xff] }
  0xf8   :  { %425 = vperm.xlu0 %1590, %v51_v41   ;;  %772 = vperm.xlu1 %1586, %v1784_v26  }
  0xf9   :  { %v2107_v62 = vpop.permute.xlu1 %430 }
  0xfa   :  { %3177 = vst [vmem:[#allocation55_spill] sm:$0xff] %v2107_v62  ;;  %v2112_v1 = vpop.permute.xlu0 %992 }
  0xfb   :  { %3178 = vst [vmem:[#allocation56_spill] sm:$0xff] %v2112_v1  ;;  %v2129_v1 = vld [vmem:[%s3077_s3 + $0x20] sm:$0xff] }
  0xfc   :  { %435 = vperm.xlu0 %1590, %v53_v43   ;;  %780 = vperm.xlu1 %1586, %v1796_v28  }
  0xfd   :  { %v2115_v0 = vpop.permute.xlu1 %440 }
  0xfe   :  { %3179 = vst [vmem:[#allocation57_spill] sm:$0xff] %v2115_v0  ;;  %v2140_v0 = vld [vmem:[%s3077_s3 + $0x30] sm:$0xff] }
  0xff   :  { %v2122_v41 = vpop.permute.xlu0 %89 }
 0x100   :  { %3180 = vst [vmem:[#allocation58_spill] sm:$0xff] %v2122_v41  ;;  %1134 = vperm.xlu0 %1590, %v2120_v35   ;;  %788 = vperm.xlu1 %1586, %v1808_v30   ;;  %v2218_v41 = vld [vmem:[%s3077_s3 + $0xa0] sm:$0xff] }
 0x101   :  { %3187 = vst [vmem:[#allocation64_spill] sm:$0xff] %v2218_v41 }
 0x102   :  { %v2131_v43 = vpop.permute.xlu1 %480 }
 0x103   :  { %3181 = vst [vmem:[#allocation59_spill] sm:$0xff] %v2131_v43  ;;  %v2133_v62 = vpop.permute.xlu0 %94  ;;  %v2196_v43 = vld [vmem:[%s3077_s3 + $0x80] sm:$0xff] }
 0x104   :  { %3182 = vst [vmem:[#allocation60_spill] sm:$0xff] %v2133_v62  ;;  %1149 = vperm.xlu0 %1590, %v2129_v1   ;;  %796 = vperm.xlu1 %1586, %v1820_v32   ;;  %3185 = vst [vmem:[#allocation62_spill] sm:$0xff] %v2196_v43  ;;  %v2240_v62 = vld [vmem:[%s3077_s3 + $0xc0] sm:$0xff] }
 0x105   :  { %3189 = vst [vmem:[#allocation66_spill] sm:$0xff] %v2240_v62 }
 0x106   :  { %v2142_v60 = vpop.permute.xlu1 %484 }
 0x107   :  { %3183 = vst [vmem:[#allocation61_spill] sm:$0xff] %v2142_v60  ;;  %v2144_v37 = vpop.permute.xlu0 %109 }
 0x108   :  { %1159 = vperm.xlu0 %1590, %v2140_v0   ;;  %1589 = vset.pattern.permute.xlu1 %v3184_v45 }
 0x109   :  { %872 = vperm.xlu1 %1589, %v1645_v3  }
 0x10a   :  { %v2154_v39 = vpop.permute.xlu1 %492 }
 0x10b   :  { %v2156_v56 = vpop.permute.xlu0 %119 }
 0x10c   :  { %1169 = vperm.xlu0 %1590, %v2152_v58  }
 0x10d   :  { %876 = vperm.xlu1 %1589, %v1640_v2  }
 0x10e   :  { %v2165_v45 = vpop.permute.xlu1 %500 }
 0x10f   :  { %v2167_v3 = vpop.permute.xlu0 %129 }
 0x110   :  { %1179 = vperm.xlu0 %1590, %v2163_v49  }
 0x111   :  { %884 = vperm.xlu1 %1589, %v1657_v5  }
 0x112   :  { %v2176_v60 = vpop.permute.xlu1 %508 }
 0x113   :  { %v2178_v2 = vpop.permute.xlu0 %139 }
 0x114   :  { %1189 = vperm.xlu0 %1590, %v2174_v53  }
 0x115   :  { %892 = vperm.xlu1 %1589, %v1669_v7  }
 0x116   :  { %v2187_v50 = vpop.permute.xlu1 %516 }
 0x117   :  { %v2189_v5 = vpop.permute.xlu0 %149 }
 0x118   :  { %1199 = vperm.xlu0 %1590, %v2185_v34  }
 0x119   :  { %900 = vperm.xlu1 %1589, %v1681_v9  }
 0x11a   :  { %v2198_v48 = vpop.permute.xlu1 %524 }
 0x11b   :  { %v2200_v7 = vpop.permute.xlu0 %159 }
 0x11c   :  { %1209 = vperm.xlu0 %1590, %v2196_v43  }
 0x11d   :  { %908 = vperm.xlu1 %1589, %v1693_v11  }
 0x11e   :  { %v2209_v47 = vpop.permute.xlu1 %532 }
 0x11f   :  { %v2211_v9 = vpop.permute.xlu0 %169 }
 0x120   :  { %1219 = vperm.xlu0 %1590, %v2207_v54   ;;  %v2262_v54 = vld [vmem:[%s3077_s3 + $0xe0] sm:$0xff] }
 0x121   :  { %916 = vperm.xlu1 %1589, %v1705_v13   ;;  %3195 = vst [vmem:[#allocation72_spill] sm:$0xff] %v2262_v54 }
 0x122   :  { %v2220_v52 = vpop.permute.xlu1 %540 }
 0x123   :  { %v2222_v11 = vpop.permute.xlu0 %179 }
 0x124   :  { %1229 = vperm.xlu0 %1590, %v2218_v41  }
 0x125   :  { %924 = vperm.xlu1 %1589, %v1717_v15  }
 0x126   :  { %v2231_v51 = vpop.permute.xlu1 %548 }
 0x127   :  { %v2233_v13 = vpop.permute.xlu0 %189 }
 0x128   :  { %1239 = vperm.xlu0 %1590, %v2229_v46  }
 0x129   :  { %932 = vperm.xlu1 %1589, %v1729_v17  }
 0x12a   :  { %v2242_v41 = vpop.permute.xlu1 %556 }
 0x12b   :  { %3190 = vst [vmem:[#allocation67_spill] sm:$0xff] %v2242_v41  ;;  %v2244_v15 = vpop.permute.xlu0 %199 }
 0x12c   :  { %3191 = vst [vmem:[#allocation68_spill] sm:$0xff] %v2244_v15  ;;  %1249 = vperm.xlu0 %1590, %v2240_v62  }
 0x12d   :  { %940 = vperm.xlu1 %1589, %v1741_v19  }
 0x12e   :  { %v2253_v46 = vpop.permute.xlu1 %564 }
 0x12f   :  { %3193 = vst [vmem:[#allocation70_spill] sm:$0xff] %v2253_v46  ;;  %v2255_v17 = vpop.permute.xlu0 %209 }
 0x130   :  { %3194 = vst [vmem:[#allocation71_spill] sm:$0xff] %v2255_v17  ;;  %1259 = vperm.xlu0 %1590, %v2251_v44   ;;  %v3200_v44 = vmov 1  }
 0x131   :  { %948 = vperm.xlu1 %1589, %v1753_v21  }
 0x132   :  { %v2264_v62 = vpop.permute.xlu1 %572 }
 0x133   :  { %3196 = vst [vmem:[#allocation73_spill] sm:$0xff] %v2264_v62  ;;  %v2266_v19 = vpop.permute.xlu0 %219 }
 0x134   :  { %3197 = vst [vmem:[#allocation74_spill] sm:$0xff] %v2266_v19  ;;  %1269 = vperm.xlu0 %1590, %v2262_v54  }
 0x135   :  { %956 = vperm.xlu1 %1589, %v1765_v23  }
 0x136   :  { %v2270_v46 = vpop.permute.xlu1 %580 }
 0x137   :  { %3198 = vst [vmem:[#allocation75_spill] sm:$0xff] %v2270_v46  ;;  %v2272_v42 = vpop.permute.xlu0 %229 }
 0x138   :  { %3199 = vst [vmem:[#allocation76_spill] sm:$0xff] %v2272_v42  ;;  %1592 = vset.pattern.permute.xlu0 %v3200_v44 }
 0x139   :  { %476 = vperm.xlu0 %1592, %v1825_v33   ;;  %964 = vperm.xlu1 %1589, %v1777_v25  }
 0x13a   :  { %v2277_v21 = vpop.permute.xlu1 %588 }
 0x13b   :  { %3201 = vst [vmem:[#allocation77_spill] sm:$0xff] %v2277_v21  ;;  %v2279_v17 = vpop.permute.xlu0 %239 }
 0x13c   :  { %3202 = vst [vmem:[#allocation78_spill] sm:$0xff] %v2279_v17 }
 0x13d   :  { %488 = vperm.xlu0 %1592, %v1652_v4   ;;  %972 = vperm.xlu1 %1589, %v1789_v27   ;;  %v1095_v27 = vld [vmem:[%s3077_s3] sm:$0xff] }
 0x13e   :  { %v2283_v54 = vpop.permute.xlu1 %596 }
 0x13f   :  { %3203 = vst [vmem:[#allocation79_spill] sm:$0xff] %v2283_v54  ;;  %v2285_v23 = vpop.permute.xlu0 %285 }
 0x140   :  { %3204 = vst [vmem:[#allocation80_spill] sm:$0xff] %v2285_v23 }
 0x141   :  { %496 = vperm.xlu0 %1592, %v1664_v6   ;;  %980 = vperm.xlu1 %1589, %v1801_v29   ;;  %v3208_v6 = vmov 0  }
 0x143   :  { %v2289_v42 = vpop.permute.xlu0 %295  ;;  %v2291_v33 = vpop.permute.xlu1 %672 }
 0x144   :  { %3205 = vst [vmem:[#allocation81_spill] sm:$0xff] %v2289_v42  ;;  %3206 = vst [vmem:[#allocation82_spill] sm:$0xff] %v2291_v33 }
 0x145   :  { %504 = vperm.xlu0 %1592, %v1676_v8   ;;  %988 = vperm.xlu1 %1589, %v1813_v31   ;;  %v2311_v8 = vld [vmem:[%s3077_s3 + $0x10] sm:$0xff] }
 0x147   :  { %v2295_v25 = vpop.permute.xlu0 %305  ;;  %v2297_v4 = vpop.permute.xlu1 %680 }
 0x148   :  { %3207 = vst [vmem:[#allocation83_spill] sm:$0xff] %v2297_v4 }
 0x149   :  { %512 = vperm.xlu0 %1592, %v1688_v10   ;;  %1591 = vset.pattern.permute.xlu1 %v3208_v6  ;;  %v1098_v10 = vld [vmem:[%s3077_s3 + $0x18] sm:$0xff] }
 0x14a   :  { %1129 = vperm.xlu1 %1591, %v1095_v27  }
 0x14b   :  { %v2304_v29 = vpop.permute.xlu0 %315  ;;  %v2306_v54 = vpop.permute.xlu1 %684 }
 0x14c   :  { %3209 = vst [vmem:[#allocation84_spill] sm:$0xff] %v2306_v54 }
 0x14d   :  { %520 = vperm.xlu0 %1592, %v1700_v12   ;;  %v1100_v12 = vld [vmem:[%s3077_s3 + $0x28] sm:$0xff] }
 0x14e   :  { %1139 = vperm.xlu1 %1591, %v2311_v8  }
 0x14f   :  { %v2315_v31 = vpop.permute.xlu0 %325  ;;  %v2317_v4 = vpop.permute.xlu1 %692 }
 0x150   :  { %3210 = vst [vmem:[#allocation85_spill] sm:$0xff] %v2317_v4 }
 0x151   :  { %528 = vperm.xlu0 %1592, %v1712_v14   ;;  %v1102_v14 = vld [vmem:[%s3077_s3 + $0x38] sm:$0xff] }
 0x152   :  { %1144 = vperm.xlu1 %1591, %v1098_v10  }
 0x153   :  { %v2323_v54 = vpop.permute.xlu0 %335  ;;  %v2325_v33 = vpop.permute.xlu1 %700 }
 0x154   :  { %3211 = vst [vmem:[#allocation86_spill] sm:$0xff] %v2325_v33 }
 0x155   :  { %536 = vperm.xlu0 %1592, %v1724_v16   ;;  %v2346_v16 = vld [vmem:[%s3077_s3 + $0x48] sm:$0xff] }
 0x156   :  { %1154 = vperm.xlu1 %1591, %v1100_v12  }
 0x157   :  { %v2331_v42 = vpop.permute.xlu0 %345  ;;  %v2333_v4 = vpop.permute.xlu1 %708 }
 0x158   :  { %3212 = vst [vmem:[#allocation87_spill] sm:$0xff] %v2333_v4 }
 0x159   :  { %544 = vperm.xlu0 %1592, %v1736_v18   ;;  %v2357_v18 = vld [vmem:[%s3077_s3 + $0x58] sm:$0xff] }
 0x15a   :  { %1164 = vperm.xlu1 %1591, %v1102_v14  }
 0x15b   :  { %v2339_v6 = vpop.permute.xlu0 %355  ;;  %v2341_v33 = vpop.permute.xlu1 %716 }
 0x15c   :  { %3213 = vst [vmem:[#allocation88_spill] sm:$0xff] %v2341_v33 }
 0x15d   :  { %552 = vperm.xlu0 %1592, %v1748_v20   ;;  %v2368_v20 = vld [vmem:[%s3077_s3 + $0x68] sm:$0xff] }
 0x15e   :  { %1174 = vperm.xlu1 %1591, %v2346_v16  }
 0x15f   :  { %v2350_v4 = vpop.permute.xlu0 %365  ;;  %v2352_v17 = vpop.permute.xlu1 %724 }
 0x160   :  { %3214 = vst [vmem:[#allocation89_spill] sm:$0xff] %v2352_v17 }
 0x161   :  { %560 = vperm.xlu0 %1592, %v1760_v22   ;;  %v2379_v22 = vld [vmem:[%s3077_s3 + $0x78] sm:$0xff] }
 0x162   :  { %1184 = vperm.xlu1 %1591, %v2357_v18  }
 0x163   :  { %v2361_v33 = vpop.permute.xlu0 %375  ;;  %v2363_v21 = vpop.permute.xlu1 %732 }
 0x164   :  { %3215 = vst [vmem:[#allocation90_spill] sm:$0xff] %v2363_v21 }
 0x165   :  { %568 = vperm.xlu0 %1592, %v1772_v24   ;;  %v2390_v24 = vld [vmem:[%s3077_s3 + $0x88] sm:$0xff] }
 0x166   :  { %1194 = vperm.xlu1 %1591, %v2368_v20  }
 0x167   :  { %v2372_v17 = vpop.permute.xlu0 %385  ;;  %v2374_v23 = vpop.permute.xlu1 %740 }
 0x168   :  { %3216 = vst [vmem:[#allocation91_spill] sm:$0xff] %v2372_v17  ;;  %3217 = vst [vmem:[#allocation92_spill] sm:$0xff] %v2374_v23 }
 0x169   :  { %576 = vperm.xlu0 %1592, %v1784_v26   ;;  %v2401_v26 = vld [vmem:[%s3077_s3 + $0x98] sm:$0xff] }
 0x16a   :  { %1204 = vperm.xlu1 %1591, %v2379_v22  }
 0x16b   :  { %v2383_v21 = vpop.permute.xlu0 %395  ;;  %v2385_v46 = vpop.permute.xlu1 %748 }
 0x16c   :  { %3218 = vst [vmem:[#allocation93_spill] sm:$0xff] %v2383_v21  ;;  %3219 = vst [vmem:[#allocation94_spill] sm:$0xff] %v2385_v46 }
 0x16d   :  { %584 = vperm.xlu0 %1592, %v1796_v28   ;;  %v2412_v28 = vld [vmem:[%s3077_s3 + $0xa8] sm:$0xff] }
 0x16e   :  { %1214 = vperm.xlu1 %1591, %v2390_v24  }
 0x16f   :  { %v2394_v23 = vpop.permute.xlu0 %405  ;;  %v2396_v19 = vpop.permute.xlu1 %756 }
 0x170   :  { %3220 = vst [vmem:[#allocation95_spill] sm:$0xff] %v2394_v23  ;;  %3221 = vst [vmem:[#allocation96_spill] sm:$0xff] %v2396_v19 }
 0x171   :  { %592 = vperm.xlu0 %1592, %v1808_v30   ;;  %v2423_v30 = vld [vmem:[%s3077_s3 + $0xb8] sm:$0xff] }
 0x172   :  { %1224 = vperm.xlu1 %1591, %v2401_v26  }
 0x173   :  { %v2405_v46 = vpop.permute.xlu0 %415  ;;  %v2407_v62 = vpop.permute.xlu1 %764 }
 0x174   :  { %3222 = vst [vmem:[#allocation97_spill] sm:$0xff] %v2405_v46  ;;  %3223 = vst [vmem:[#allocation98_spill] sm:$0xff] %v2407_v62  ;;  %v247_v46 = vlaneseq }
 0x175   :  { %600 = vperm.xlu0 %1592, %v1820_v32   ;;  %v2433_v32 = vld [vmem:[%s3077_s3 + $0xc8] sm:$0xff] }
 0x176   :  { %1234 = vperm.xlu1 %1591, %v2412_v28   ;;  %3228 = vst [vmem:[#allocation103_spill] sm:$0xff] %v2433_v32 }
 0x177   :  { %v2416_v19 = vpop.permute.xlu0 %425  ;;  %v2418_v23 = vpop.permute.xlu1 %772 }
 0x178   :  { %3224 = vst [vmem:[#allocation99_spill] sm:$0xff] %v2416_v19  ;;  %3225 = vst [vmem:[#allocation100_spill] sm:$0xff] %v2418_v23  ;;  %v248_v19 = vshrl.u32 %v247_v46, 7 }
 0x179   :  { %1364 = vperm.xlu0 %1592, %v1095_v27   ;;  %v2443_v27 = vld [vmem:[%s3077_s3 + $0xd8] sm:$0xff] }
 0x17a   :  { %1244 = vperm.xlu1 %1591, %v2423_v30   ;;  %3231 = vst [vmem:[#allocation106_spill] sm:$0xff] %v2443_v27  ;;  %v605_v15 = vsub.s32 1, %v248_v19 }
 0x17b   :  { %v2426_v62 = vpop.permute.xlu0 %435  ;;  %v2428_v21 = vpop.permute.xlu1 %780 }
 0x17c   :  { %3226 = vst [vmem:[#allocation101_spill] sm:$0xff] %v2426_v62  ;;  %3227 = vst [vmem:[#allocation102_spill] sm:$0xff] %v2428_v21  ;;  %v249_v62 = vsub.s32 0, %v248_v19  ;;  %v22_v21 = vld [vmem:[%s3078_s0] sm:$0xf] }
 0x17d   :  { %1376 = vperm.xlu0 %1592, %v1098_v10  }
 0x17e   :  { %1254 = vperm.xlu1 %1591, %v2433_v32   ;;  %v2463_v32 = vrot.slane %v22_v21, %v605_v15 }
 0x17f   :  { %v2436_v23 = vpop.permute.xlu0 %1134  ;;  %v2438_v43 = vpop.permute.xlu1 %788 }
 0x180   :  { %3229 = vst [vmem:[#allocation104_spill] sm:$0xff] %v2436_v23  ;;  %3230 = vst [vmem:[#allocation105_spill] sm:$0xff] %v2438_v43  ;;  %v2454_v43 = vld [vmem:[%s3077_s3 + $0xe8] sm:$0xff]  ;;  %v2456_v23 = vrot.slane %v22_v21, %v249_v62 }
 0x181   :  { %1384 = vperm.xlu0 %1592, %v1100_v12   ;;  %3233 = vst [vmem:[#allocation108_spill] sm:$0xff] %v2454_v43  ;;  %v801_v12 = vsub.s32 2, %v248_v19 }
 0x182   :  { %1264 = vperm.xlu1 %1591, %v2443_v27   ;;  %v255_v41 = vmul.f32 %v2456_v23, %v2144_v37  ;;  %v257_v62 = vmul.f32 %v2456_v23, %v2156_v56  ;;  %v611_v37 = vmul.f32 %v2463_v32, %v2154_v39  ;;  %v613_v56 = vmul.f32 %v2463_v32, %v2165_v45 }
 0x183   :  { %v1150_v46 = vpop.permute.xlu0 %1149  ;;  %v2449_v10 = vpop.permute.xlu1 %796  ;;  %v259_v39 = vmul.f32 %v2456_v23, %v2167_v3  ;;  %v261_v45 = vmul.f32 %v2456_v23, %v2178_v2 }
 0x184   :  { %3232 = vst [vmem:[#allocation107_spill] sm:$0xff] %v2449_v10  ;;  %v447_v10 = vadd.f32 %v2295_v25, %v255_v41  ;;  %v449_v15 = vadd.f32 %v2304_v29, %v257_v62 }
 0x185   :  { %1392 = vperm.xlu0 %1592, %v1102_v14   ;;  %v2470_v14 = vrot.slane %v22_v21, %v801_v12 }
 0x186   :  { %1274 = vperm.xlu1 %1591, %v2454_v43   ;;  %v997_v43 = vsub.s32 3, %v248_v19  ;;  %v643_v41 = vadd.f32 %v611_v37, %v447_v10 }
 0x187   :  { %v1160_v40 = vpop.permute.xlu0 %1159  ;;  %v811_v2 = vmul.f32 %v2470_v14, %v1916_v59 }
 0x188   :  { %v2461_v27 = vpop.permute.xlu1 %872  ;;  %v2483_v19 = vrot.slane %v22_v21, %v997_v43  ;;  %v615_v43 = vmul.f32 %v2463_v32, %v2176_v60  ;;  %v263_v60 = vmul.f32 %v2456_v23, %v2189_v5 }
 0x189   :  { %3234 = vst [vmem:[#allocation109_spill] sm:$0xff] %v2461_v27  ;;  %1400 = vperm.xlu0 %1592, %v2346_v16   ;;  %v451_v16 = vadd.f32 %v2315_v31, %v259_v39 }
 0x18a   :  { %1593 = vset.pattern.permute.xlu1 %v3200_v44  ;;  %v807_v44 = vmul.f32 %v2470_v14, %v1904_v55  ;;  %v809_v55 = vmul.f32 %v2470_v14, %v1910_v57 }
 0x18b   :  { %v1170_v17 = vpop.permute.xlu0 %1169  ;;  %1368 = vperm.xlu1 %1593, %v2120_v35   ;;  %v645_v35 = vadd.f32 %v613_v56, %v449_v15  ;;  %v647_v12 = vadd.f32 %v615_v43, %v451_v16 }
 0x18c   :  { %v2476_v27 = vpop.permute.xlu1 %876 }
 0x18d   :  { %1408 = vperm.xlu0 %1592, %v2357_v18   ;;  %v839_v18 = vadd.f32 %v807_v44, %v643_v41  ;;  %v841_v31 = vadd.f32 %v809_v55, %v645_v35  ;;  %v843_v59 = vadd.f32 %v811_v2, %v647_v12 }
 0x18f   :  { %v2487_v25 = vpop.permute.xlu0 %1179  ;;  %1372 = vperm.xlu1 %1593, %v2311_v8  }
 0x190   :  { %v885_v29 = vpop.permute.xlu1 %884 }
 0x191   :  { %v1003_v10 = vmul.f32 %v2483_v19, %v885_v29  ;;  %1416 = vperm.xlu0 %1592, %v2368_v20   ;;  %v453_v20 = vadd.f32 %v2323_v54, %v261_v45 }
 0x193   :  { %v2499_v3 = vadd.f32 %v1003_v10, %v839_v18  ;;  %v2501_v21 = vpop.permute.xlu0 %1189  ;;  %1380 = vperm.xlu1 %1593, %v2129_v1   ;;  %v617_v1 = vmul.f32 %v2463_v32, %v2187_v50  ;;  %v619_v50 = vmul.f32 %v2463_v32, %v2198_v48 }
 0x194   :  { %v893_v8 = vpop.permute.xlu1 %892 }
 0x195   :  { %v3110_v62 = vmax.f32 %v2499_v3, 0.0  ;;  %v1005_v57 = vmul.f32 %v2483_v19, %v893_v8  ;;  %1424 = vperm.xlu0 %1592, %v2379_v22   ;;  %v455_v22 = vadd.f32 %v2331_v42, %v263_v60  ;;  %v649_v5 = vadd.f32 %v617_v1, %v453_v20 }
 0x196   :  { %v819_v60 = vmul.f32 %v2470_v14, %v1940_v38 }
 0x197   :  { %v2516_v37 = vmul.f32 %v1150_v46, %v3110_v62  ;;  %v2518_v54 = vadd.f32 %v1005_v57, %v841_v31  ;;  %v2520_v15 = vpop.permute.xlu0 %1199  ;;  %1388 = vperm.xlu1 %1593, %v2140_v0   ;;  %v813_v46 = vmul.f32 %v2470_v14, %v1922_v61  ;;  %v265_v0 = vmul.f32 %v2456_v23, %v2200_v7  ;;  %v3300_v62 = vld [vmem:[#allocation87_spill] sm:$0xff] }
 0x198   :  { %v901_v41 = vpop.permute.xlu1 %900  ;;  %v621_v7 = vmul.f32 %v2463_v32, %v2209_v47 }
 0x199   :  { %v3109_v56 = vmax.f32 %v2518_v54, 0.0  ;;  %v1007_v44 = vmul.f32 %v2483_v19, %v901_v41  ;;  %1432 = vperm.xlu0 %1592, %v2390_v24   ;;  %v651_v24 = vadd.f32 %v619_v50, %v455_v22  ;;  %v457_v48 = vadd.f32 %v2339_v6, %v265_v0  ;;  %v3238_v50 = vld [vmem:[#allocation67_spill] sm:$0xff]  ;;  %v3239_v0 = vld [vmem:[#allocation68_spill] sm:$0xff] }
 0x19a   :  { %v845_v61 = vadd.f32 %v813_v46, %v649_v5  ;;  %v627_v46 = vmul.f32 %v2463_v32, %v3238_v50  ;;  %v3251_v50 = vld [vmem:[#allocation16_spill] sm:$0xff] }
 0x19b   :  { %v2535_v42 = vmul.f32 %v1160_v40, %v3109_v56  ;;  %v2537_v39 = vadd.f32 %v1007_v44, %v843_v59  ;;  %v2539_v35 = vpop.permute.xlu0 %1209  ;;  %1396 = vperm.xlu1 %1593, %v2152_v58   ;;  %v815_v40 = vmul.f32 %v2470_v14, %v1928_v63  ;;  %v267_v58 = vmul.f32 %v2456_v23, %v2211_v9  ;;  %v3236_v59 = vld [vmem:[#allocation103_spill] sm:$0xff]  ;;  %v3237_v44 = vld [vmem:[#allocation12_spill] sm:$0xff] }
 0x19c   :  { %v909_v29 = vpop.permute.xlu1 %908  ;;  %v653_v45 = vadd.f32 %v621_v7, %v457_v48  ;;  %v269_v9 = vmul.f32 %v2456_v23, %v2222_v11  ;;  %v3299_v56 = vld [vmem:[#allocation32_spill] sm:$0xff] }
 0x19d   :  { %v3105_v16 = vmax.f32 %v2537_v39, 0.0  ;;  %v1009_v18 = vmul.f32 %v2483_v19, %v909_v29  ;;  %1440 = vperm.xlu0 %1592, %v2401_v26   ;;  %v847_v43 = vadd.f32 %v815_v40, %v651_v24  ;;  %v459_v63 = vadd.f32 %v2350_v4, %v267_v58  ;;  %v3241_v58 = vld [vmem:[#allocation93_spill] sm:$0xff] }
 0x19f   :  { %v2554_v10 = vmul.f32 %v1170_v17, %v3105_v16  ;;  %v2556_v6 = vadd.f32 %v1009_v18, %v845_v61  ;;  %v2558_v55 = vpop.permute.xlu0 %1219  ;;  %1404 = vperm.xlu1 %1593, %v2163_v49   ;;  %v817_v17 = vmul.f32 %v2470_v14, %v1934_v36  ;;  %v623_v49 = vmul.f32 %v2463_v32, %v2220_v52  ;;  %v3240_v61 = vld [vmem:[#allocation62_spill] sm:$0xff] }
 0x1a0   :  { %v917_v26 = vpop.permute.xlu1 %916  ;;  %v3276_v16 = vld [vmem:[#allocation82_spill] sm:$0xff] }
 0x1a1   :  { %v3104_v47 = vmax.f32 %v2556_v6, 0.0  ;;  %v1011_v8 = vmul.f32 %v2483_v19, %v917_v26  ;;  %1448 = vperm.xlu0 %1592, %v2412_v28   ;;  %v461_v28 = vadd.f32 %v2361_v33, %v269_v9  ;;  %v655_v20 = vadd.f32 %v623_v49, %v459_v63  ;;  %v3242_v63 = vld [vmem:[#allocation106_spill] sm:$0xff] }
 0x1a2   :  { %v849_v57 = vadd.f32 %v817_v17, %v653_v45  ;;  %v3244_v9 = vld [vmem:[#allocation14_spill] sm:$0xff] }
 0x1a3   :  { %v2574_v31 = vmul.f32 %v2487_v25, %v3104_v47  ;;  %v2576_v4 = vadd.f32 %v1011_v8, %v847_v43  ;;  %v2578_v12 = vpop.permute.xlu0 %1229  ;;  %1412 = vperm.xlu1 %1593, %v2174_v53   ;;  %v625_v25 = vmul.f32 %v2463_v32, %v2231_v51  ;;  %v271_v53 = vmul.f32 %v2456_v23, %v2233_v13  ;;  %v3235_v51 = vld [vmem:[#allocation91_spill] sm:$0xff]  ;;  %v3245_v49 = vld [vmem:[#allocation70_spill] sm:$0xff] }
 0x1a4   :  { %v925_v11 = vpop.permute.xlu1 %924  ;;  %v851_v5 = vadd.f32 %v819_v60, %v655_v20  ;;  %v3243_v8 = vld [vmem:[#allocation71_spill] sm:$0xff]  ;;  %v823_v17 = vmul.f32 %v2470_v14, %v3244_v9 }
 0x1a5   :  { %v3103_v36 = vmax.f32 %v2576_v4, 0.0  ;;  %v1013_v52 = vmul.f32 %v2483_v19, %v925_v11  ;;  %1456 = vperm.xlu0 %1592, %v2423_v30   ;;  %v657_v30 = vadd.f32 %v625_v25, %v461_v28  ;;  %v463_v41 = vadd.f32 %v3235_v51, %v271_v53  ;;  %v3247_v25 = vld [vmem:[#allocation95_spill] sm:$0xff] }
 0x1a6   :  { %v629_v28 = vmul.f32 %v2463_v32, %v3245_v49  ;;  %v3256_v49 = vld [vmem:[#allocation18_spill] sm:$0xff] }
 0x1a7   :  { %v2594_v33 = vmul.f32 %v2501_v21, %v3103_v36  ;;  %v2596_v2 = vadd.f32 %v1013_v52, %v849_v57  ;;  %v2598_v1 = vpop.permute.xlu0 %1239  ;;  %1420 = vperm.xlu1 %1593, %v2185_v34   ;;  %v821_v21 = vmul.f32 %v2470_v14, %v3237_v44  ;;  %v273_v34 = vmul.f32 %v2456_v23, %v3239_v0  ;;  %v3246_v52 = vld [vmem:[#allocation63_spill] sm:$0xff]  ;;  %v3275_v36 = vld [vmem:[#allocation81_spill] sm:$0xff] }
 0x1a8   :  { %v933_v22 = vpop.permute.xlu1 %932  ;;  %v659_v7 = vadd.f32 %v627_v46, %v463_v41  ;;  %v825_v46 = vmul.f32 %v2470_v14, %v3251_v50  ;;  %v3262_v50 = vld [vmem:[#allocation27_spill] sm:$0xff] }
 0x1a9   :  { %v3102_v38 = vmax.f32 %v2596_v2, 0.0  ;;  %v1015_v13 = vmul.f32 %v2483_v19, %v933_v22  ;;  %1464 = vperm.xlu0 %1592, %v3236_v59   ;;  %v853_v40 = vadd.f32 %v821_v21, %v657_v30  ;;  %v465_v26 = vadd.f32 %v3241_v58, %v273_v34  ;;  %v3250_v59 = vld [vmem:[#allocation74_spill] sm:$0xff]  ;;  %v2652_v21 = vld [vmem:[%s3077_s3 + $0xf0] sm:$0xff] }
 0x1aa   :  { %v855_v51 = vadd.f32 %v823_v17, %v659_v7  ;;  %v277_v44 = vmul.f32 %v2456_v23, %v3250_v59  ;;  %v3261_v59 = vld [vmem:[#allocation58_spill] sm:$0xff] }
 0x1ab   :  { %v2614_v24 = vmul.f32 %v2520_v15, %v3102_v38  ;;  %v2616_v29 = vadd.f32 %v1015_v13, %v851_v5  ;;  %v2618_v48 = vpop.permute.xlu0 %1249  ;;  %1428 = vperm.xlu1 %1593, %v3240_v61   ;;  %v275_v15 = vmul.f32 %v2456_v23, %v3243_v8  ;;  %v661_v30 = vadd.f32 %v629_v28, %v465_v26  ;;  %v3248_v5 = vld [vmem:[#allocation108_spill] sm:$0xff]  ;;  %v3249_v13 = vld [vmem:[#allocation73_spill] sm:$0xff] }
 0x1ac   :  { %v941_v18 = vpop.permute.xlu1 %940  ;;  %v3254_v26 = vld [vmem:[#allocation97_spill] sm:$0xff]  ;;  %v827_v28 = vmul.f32 %v2470_v14, %v3256_v49 }
 0x1ad   :  { %v3100_v43 = vmax.f32 %v2616_v29, 0.0  ;;  %v1017_v45 = vmul.f32 %v2483_v19, %v941_v18  ;;  %1472 = vperm.xlu0 %1592, %v3242_v63   ;;  %v467_v60 = vadd.f32 %v3247_v25, %v275_v15  ;;  %v3252_v18 = vld [vmem:[#allocation64_spill] sm:$0xff]  ;;  %v857_v15 = vadd.f32 %v825_v46, %v661_v30 }
 0x1af   :  { %v2634_v11 = vmul.f32 %v2539_v35, %v3100_v43  ;;  %v2636_v20 = vadd.f32 %v1017_v45, %v853_v40  ;;  %v2638_v57 = vpop.permute.xlu0 %1259  ;;  %1436 = vperm.xlu1 %1593, %v3246_v52   ;;  %v631_v35 = vmul.f32 %v2463_v32, %v3249_v13  ;;  %v3253_v40 = vld [vmem:[#allocation60_spill] sm:$0xff]  ;;  %v469_v45 = vadd.f32 %v3254_v26, %v277_v44  ;;  %v3257_v52 = vld [vmem:[#allocation75_spill] sm:$0xff]  ;;  %v3272_v43 = vld [vmem:[#allocation101_spill] sm:$0xff] }
 0x1b0   :  { %v949_v53 = vpop.permute.xlu1 %948  ;;  %v252_v7 = vmul.f32 %v2456_v23, %v3253_v40  ;;  %v633_v25 = vmul.f32 %v2463_v32, %v3257_v52  ;;  %v251_v44 = vmul.f32 %v2456_v23, %v3261_v59  ;;  %v3269_v59 = vld [vmem:[#allocation78_spill] sm:$0xff] }
 0x1b1   :  { %v3099_v22 = vmax.f32 %v2636_v20, 0.0  ;;  %v1019_v41 = vmul.f32 %v2483_v19, %v949_v53  ;;  %1480 = vperm.xlu0 %1592, %v3248_v5   ;;  %v663_v58 = vadd.f32 %v631_v35, %v467_v60  ;;  %v2681_v60 = vld [vmem:[%s3077_s3 + $0xf8] sm:$0xff]  ;;  %v3258_v53 = vld [vmem:[#allocation3_spill] sm:$0xff] }
 0x1b2   :  { %v804_v30 = vmul.f32 %v2470_v14, %v3258_v53  ;;  %v3260_v35 = vld [vmem:[#allocation65_spill] sm:$0xff]  ;;  %v444_v46 = vadd.f32 %v3262_v50, %v252_v7  ;;  %v281_v50 = vmul.f32 %v2456_v23, %v3269_v59 }
 0x1b3   :  { %v2659_v0 = vmul.f32 %v2558_v55, %v3099_v22  ;;  %v2661_v34 = vadd.f32 %v1019_v41, %v855_v51  ;;  %v2663_v61 = vpop.permute.xlu0 %1269  ;;  %1444 = vperm.xlu1 %1593, %v3252_v18   ;;  %v3255_v55 = vld [vmem:[#allocation2_spill] sm:$0xff]  ;;  %v3259_v51 = vld [vmem:[#allocation76_spill] sm:$0xff]  ;;  %v665_v18 = vadd.f32 %v633_v25, %v469_v45  ;;  %v3266_v45 = vld [vmem:[#allocation59_spill] sm:$0xff] }
 0x1b4   :  { %v957_v63 = vpop.permute.xlu1 %956  ;;  %v253_v17 = vmul.f32 %v2456_v23, %v3255_v55  ;;  %v279_v41 = vmul.f32 %v2456_v23, %v3259_v51  ;;  %v3263_v55 = vld [vmem:[#allocation99_spill] sm:$0xff]  ;;  %v3265_v51 = vld [vmem:[#allocation20_spill] sm:$0xff]  ;;  %v608_v25 = vmul.f32 %v2463_v32, %v3266_v45 }
 0x1b5   :  { %v3098_v8 = vmax.f32 %v2661_v34, 0.0  ;;  %v1021_v9 = vmul.f32 %v2483_v19, %v957_v63  ;;  %1484 = vperm.xlu0 %1592, %v2652_v21   ;;  %v859_v63 = vadd.f32 %v827_v28, %v663_v58  ;;  %v829_v7 = vmul.f32 %v2470_v14, %v3265_v51  ;;  %v3267_v58 = vld [vmem:[#allocation80_spill] sm:$0xff] }
 0x1b6   :  { %v471_v49 = vadd.f32 %v3263_v55, %v279_v41  ;;  %v443_v28 = vadd.f32 %v3267_v58, %v251_v44  ;;  %v3268_v41 = vld [vmem:[#allocation77_spill] sm:$0xff]  ;;  %v3270_v55 = vld [vmem:[#allocation66_spill] sm:$0xff]  ;;  %v640_v45 = vadd.f32 %v608_v25, %v444_v46  ;;  %v445_v47 = vadd.f32 %v3275_v36, %v253_v17 }
 0x1b7   :  { %v2690_v5 = vmul.f32 %v2578_v12, %v3098_v8  ;;  %v2692_v13 = vadd.f32 %v1021_v9, %v857_v15  ;;  %1452 = vperm.xlu1 %1593, %v3260_v35   ;;  %v3264_v9 = vld [vmem:[#allocation4_spill] sm:$0xff]  ;;  %v635_v35 = vmul.f32 %v2463_v32, %v3268_v41  ;;  %v3271_v44 = vld [vmem:[#allocation22_spill] sm:$0xff]  ;;  %v861_v8 = vadd.f32 %v829_v7, %v665_v18  ;;  %v3278_v18 = vld [vmem:[#allocation79_spill] sm:$0xff] }
 0x1b8   :  { %v477_v40 = vpop.permute.xlu0 %476  ;;  %v965_v26 = vpop.permute.xlu1 %964  ;;  %v254_v53 = vmul.f32 %v2456_v23, %v3264_v9  ;;  %v1560_v9 = vld [vmem:[%s3079_s4 + $0x1] sm:$0x1]  ;;  %v831_v51 = vmul.f32 %v2470_v14, %v3271_v44  ;;  %v803_v46 = vmul.f32 %v2470_v14, %v3276_v16  ;;  %v3279_v36 = vld [vmem:[#allocation69_spill] sm:$0xff] }
 0x1b9   :  { %v3101_v52 = vmax.f32 %v2692_v13, 0.0  ;;  %v607_v12 = vmul.f32 %v2463_v32, %v477_v40  ;;  %v1023_v15 = vmul.f32 %v2483_v19, %v965_v26  ;;  %1488 = vperm.xlu0 %1592, %v2681_v60   ;;  %v667_v22 = vadd.f32 %v635_v35, %v471_v49  ;;  %v3280_v17 = vld [vmem:[#allocation61_spill] sm:$0xff] }
 0x1ba   :  { %v609_v16 = vmul.f32 %v2463_v32, %v3280_v17  ;;  %v836_v35 = vadd.f32 %v804_v30, %v640_v45  ;;  %v1001_v30 = vmul.f32 %v2483_v19, %v2476_v27  ;;  %v3286_v27 = vld [vmem:[#allocation84_spill] sm:$0xff] }
 0x1bb   :  { %v2717_v40 = vmul.f32 %v2598_v1, %v3101_v52  ;;  %v2719_v26 = vadd.f32 %v1023_v15, %v859_v63  ;;  %1460 = vperm.xlu1 %1593, %v3270_v55   ;;  %v639_v58 = vadd.f32 %v607_v12, %v443_v28  ;;  %v473_v1 = vadd.f32 %v3272_v43, %v281_v50  ;;  %v3274_v52 = vld [vmem:[#allocation29_spill] sm:$0xff] }
 0x1bc   :  { %v489_v41 = vpop.permute.xlu0 %488  ;;  %v973_v59 = vpop.permute.xlu1 %972  ;;  %v3273_v55 = vmov 0   ;;  %v446_v38 = vadd.f32 %v3274_v52, %v254_v53  ;;  %v3277_v12 = vld [vmem:[#allocation109_spill] sm:$0xff]  ;;  %v637_v43 = vmul.f32 %v2463_v32, %v3278_v18  ;;  %v3281_v53 = vld [vmem:[#allocation83_spill] sm:$0xff]  ;;  %v3283_v18 = vld [vmem:[#allocation26_spill] sm:$0xff]  ;;  %v641_v17 = vadd.f32 %v609_v16, %v445_v47 }
 0x1bd   :  { %v3106_v63 = vmax.f32 %v2719_v26, 0.0  ;;  %v1025_v15 = vmul.f32 %v2483_v19, %v973_v59  ;;  %1595 = vset.pattern.permute.xlu0 %v3273_v55  ;;  %v1000_v25 = vmul.f32 %v2483_v19, %v3277_v12  ;;  %v610_v7 = vmul.f32 %v2463_v32, %v489_v41 }
 0x1be   :  { %1563 = vperm.xlu0 %1595, %v1560_v9   ;;  %v805_v28 = vmul.f32 %v2470_v14, %v3281_v53  ;;  %v835_v50 = vadd.f32 %v803_v46, %v639_v58  ;;  %v669_v59 = vadd.f32 %v637_v43, %v473_v1  ;;  %v863_v12 = vadd.f32 %v831_v51, %v667_v22  ;;  %v3284_v51 = vld [vmem:[#allocation72_spill] sm:$0xff]  ;;  %v3285_v1 = vld [vmem:[#allocation5_spill] sm:$0xff] }
 0x1bf   :  { %v2742_v49 = vmul.f32 %v2618_v48, %v3106_v63  ;;  %v2745_v52 = vadd.f32 %v1025_v15, %v861_v8  ;;  %1468 = vperm.xlu1 %1593, %v3279_v36   ;;  %v3282_v8 = vld [vmem:[#allocation24_spill] sm:$0xff]  ;;  %v999_v36 = vmul.f32 %v2483_v19, %v3283_v18  ;;  %v2758_v63 = vadd.f32 %v1000_v25, %v836_v35  ;;  %v3288_v18 = vld [vmem:[#allocation6_spill] sm:$0xff] }
 0x1c0   :  { %v497_v9 = vpop.permute.xlu0 %496  ;;  %v981_v44 = vpop.permute.xlu1 %980  ;;  %v833_v15 = vmul.f32 %v2470_v14, %v3282_v8  ;;  %v642_v45 = vadd.f32 %v610_v7, %v446_v38  ;;  %v256_v46 = vmul.f32 %v2456_v23, %v3285_v1  ;;  %v837_v43 = vadd.f32 %v805_v28, %v641_v17  ;;  %v3290_v1 = vld [vmem:[#allocation33_spill] sm:$0xff] }
 0x1c1   :  { %v3108_v48 = vmax.f32 %v2745_v52, 0.0  ;;  %v1027_v41 = vmul.f32 %v2483_v19, %v981_v44  ;;  %v612_v47 = vmul.f32 %v2463_v32, %v497_v9  ;;  %v2773_v53 = vadd.f32 %v999_v36, %v835_v50  ;;  %v3287_v44 = vld [vmem:[#allocation31_spill] sm:$0xff] }
 0x1c2   :  { %v806_v38 = vmul.f32 %v2470_v14, %v3286_v27  ;;  %v865_v7 = vadd.f32 %v833_v15, %v669_v59  ;;  %v2781_v8 = vadd.f32 %v1001_v30, %v837_v43  ;;  %v258_v59 = vmul.f32 %v2456_v23, %v3288_v18  ;;  %v3291_v43 = vld [vmem:[#allocation85_spill] sm:$0xff] }
 0x1c3   :  { %v2765_v58 = vmul.f32 %v2638_v57, %v3108_v48  ;;  %v2767_v22 = vadd.f32 %v1027_v41, %v863_v12  ;;  %1476 = vperm.xlu1 %1593, %v3284_v51   ;;  %v448_v12 = vadd.f32 %v3287_v44, %v256_v46  ;;  %v1064_v41 = vmax.f32 %v2758_v63, 0.0 }
 0x1c4   :  { %v505_v25 = vpop.permute.xlu0 %504  ;;  %v989_v16 = vpop.permute.xlu1 %988  ;;  %v838_v28 = vadd.f32 %v806_v38, %v642_v45  ;;  %v3116_v30 = vmax.f32 %v2773_v53, 0.0  ;;  %v3289_v45 = vld [vmem:[#allocation28_spill] sm:$0xff]  ;;  %v450_v46 = vadd.f32 %v3290_v1, %v258_v59  ;;  %v3293_v38 = vld [vmem:[#allocation7_spill] sm:$0xff]  ;;  %v1356_v1 = vld [vmem:[%s3079_s4] sm:$0x1] }
 0x1c5   :  { %v3107_v57 = vmax.f32 %v2767_v22, 0.0  ;;  %v1029_v35 = vmul.f32 %v2483_v19, %v989_v16  ;;  %v644_v15 = vadd.f32 %v612_v47, %v448_v12  ;;  %v614_v36 = vmul.f32 %v2463_v32, %v505_v25  ;;  %v3292_v47 = vld [vmem:[#allocation104_spill] sm:$0xff] }
 0x1c6   :  { %v1002_v51 = vmul.f32 %v2483_v19, %v3289_v45  ;;  %v808_v16 = vmul.f32 %v2470_v14, %v3291_v43  ;;  %v1288_v25 = vmul.f32 %v3292_v47, %v1064_v41  ;;  %v3294_v43 = vld [vmem:[#allocation30_spill] sm:$0xff] }
 0x1c7   :  { %v2786_v50 = vmul.f32 %v2663_v61, %v3107_v57  ;;  %v2788_v9 = vadd.f32 %v1029_v35, %v865_v7  ;;  %1594 = vset.pattern.permute.xlu1 %v3273_v55  ;;  %v3111_v7 = vmax.f32 %v2781_v8, 0.0  ;;  %v646_v12 = vadd.f32 %v614_v36, %v450_v46 }
 0x1c8   :  { %v513_v17 = vpop.permute.xlu0 %512  ;;  %1279 = vperm.xlu1 %1594, %v2652_v21   ;;  %v260_v21 = vmul.f32 %v2456_v23, %v3293_v38  ;;  %v2809_v35 = vadd.f32 %v1002_v51, %v838_v28  ;;  %v840_v44 = vadd.f32 %v808_v16, %v644_v15  ;;  %v1004_v47 = vmul.f32 %v2483_v19, %v3294_v43  ;;  %v3295_v38 = vld [vmem:[#allocation35_spill] sm:$0xff]  ;;  %v3296_v28 = vld [vmem:[#allocation86_spill] sm:$0xff] }
 0x1c9   :  { %v1130_v61 = vpop.permute.xlu1 %1129  ;;  %v616_v18 = vmul.f32 %v2463_v32, %v513_v17  ;;  %v810_v15 = vmul.f32 %v2470_v14, %v3296_v28  ;;  %v3297_v17 = vld [vmem:[#allocation8_spill] sm:$0xff] }
 0x1ca   :  { %v1287_v27 = vmul.f32 %v1130_v61, %v3116_v30  ;;  %v452_v57 = vadd.f32 %v3295_v38, %v260_v21  ;;  %v262_v51 = vmul.f32 %v2456_v23, %v3297_v17  ;;  %v3112_v46 = vmax.f32 %v2809_v35, 0.0  ;;  %v3298_v21 = vld [vmem:[#allocation37_spill] sm:$0xff]  ;;  %v3319_v30 = vld [vmem:[#allocation42_spill] sm:$0xff] }
 0x1cb   :  { %v842_v16 = vadd.f32 %v810_v15, %v646_v12  ;;  %v2827_v43 = vadd.f32 %v1004_v47, %v840_v44  ;;  %v812_v17 = vmul.f32 %v2470_v14, %v3300_v62 }
 0x1cc   :  { %v1319_v59 = vadd.f32 %v1288_v25, %v1287_v27  ;;  %v521_v45 = vpop.permute.xlu0 %520  ;;  %1284 = vperm.xlu1 %1594, %v2681_v60   ;;  %v648_v27 = vadd.f32 %v616_v18, %v452_v57  ;;  %v454_v38 = vadd.f32 %v3298_v21, %v262_v51  ;;  %v3303_v51 = vld [vmem:[#allocation88_spill] sm:$0xff] }
 0x1cd   :  { %v1140_v61 = vpop.permute.xlu1 %1139  ;;  %v618_v60 = vmul.f32 %v2463_v32, %v521_v45  ;;  %v3113_v47 = vmax.f32 %v2827_v43, 0.0  ;;  %v814_v62 = vmul.f32 %v2470_v14, %v3303_v51 }
 0x1ce   :  { %v1289_v36 = vmul.f32 %v1140_v61, %v3111_v7  ;;  %v1006_v61 = vmul.f32 %v2483_v19, %v3299_v56  ;;  %v3301_v7 = vld [vmem:[#allocation9_spill] sm:$0xff]  ;;  %v844_v44 = vadd.f32 %v812_v17, %v648_v27  ;;  %v3302_v56 = vld [vmem:[#allocation39_spill] sm:$0xff] }
 0x1cf   :  { %v264_v57 = vmul.f32 %v2456_v23, %v3301_v7  ;;  %v650_v12 = vadd.f32 %v618_v60, %v454_v38  ;;  %v3305_v60 = vld [vmem:[#allocation10_spill] sm:$0xff] }
 0x1d0   :  { %v1320_v25 = vadd.f32 %v1319_v59, %v1289_v36  ;;  %v529_v48 = vpop.permute.xlu0 %528  ;;  %1359 = vperm.xlu1 %1594, %v1356_v1   ;;  %v2840_v15 = vadd.f32 %v1006_v61, %v842_v16  ;;  %v266_v27 = vmul.f32 %v2456_v23, %v3305_v60 }
 0x1d1   :  { %v1145_v28 = vpop.permute.xlu1 %1144  ;;  %v620_v18 = vmul.f32 %v2463_v32, %v529_v48  ;;  %v456_v36 = vadd.f32 %v3302_v56, %v264_v57  ;;  %v3306_v56 = vld [vmem:[#allocation36_spill] sm:$0xff] }
 0x1d2   :  { %v1290_v45 = vmul.f32 %v1145_v28, %v3112_v46  ;;  %v3304_v28 = vld [vmem:[#allocation34_spill] sm:$0xff]  ;;  %v1010_v51 = vmul.f32 %v2483_v19, %v3306_v56 }
 0x1d3   :  { %v1008_v46 = vmul.f32 %v2483_v19, %v3304_v28  ;;  %v652_v16 = vadd.f32 %v620_v18, %v456_v36  ;;  %v3307_v28 = vld [vmem:[#allocation89_spill] sm:$0xff] }
 0x1d4   :  { %v1321_v59 = vadd.f32 %v1320_v25, %v1290_v45  ;;  %v537_v1 = vpop.permute.xlu0 %536  ;;  %v846_v25 = vadd.f32 %v814_v62, %v650_v12  ;;  %v3114_v45 = vmax.f32 %v2840_v15, 0.0 }
 0x1d5   :  { %v1155_v21 = vpop.permute.xlu1 %1154  ;;  %v622_v38 = vmul.f32 %v2463_v32, %v537_v1  ;;  %v2854_v57 = vadd.f32 %v1008_v46, %v844_v44  ;;  %v3309_v1 = vld [vmem:[#allocation11_spill] sm:$0xff] }
 0x1d6   :  { %v1292_v7 = vmul.f32 %v1155_v21, %v3113_v47  ;;  %v1322_v48 = vadd.f32 %v1321_v59, %v2516_v37  ;;  %v816_v21 = vmul.f32 %v2470_v14, %v3307_v28  ;;  %v3308_v59 = vld [vmem:[#allocation41_spill] sm:$0xff]  ;;  %v268_v36 = vmul.f32 %v2456_v23, %v3309_v1  ;;  %v3310_v28 = vld [vmem:[#allocation38_spill] sm:$0xff] }
 0x1d7   :  { %v458_v47 = vadd.f32 %v3308_v59, %v266_v27  ;;  %v2866_v46 = vadd.f32 %v1010_v51, %v846_v25  ;;  %v3115_v56 = vmax.f32 %v2854_v57, 0.0  ;;  %v1012_v27 = vmul.f32 %v2483_v19, %v3310_v28  ;;  %v3314_v28 = vld [vmem:[#allocation40_spill] sm:$0xff] }
 0x1d8   :  { %v1323_v61 = vadd.f32 %v1322_v48, %v1292_v7  ;;  %v545_v17 = vpop.permute.xlu0 %544  ;;  %v848_v62 = vadd.f32 %v816_v21, %v652_v16  ;;  %v3313_v16 = vld [vmem:[#allocation13_spill] sm:$0xff] }
 0x1d9   :  { %v1165_v37 = vpop.permute.xlu1 %1164  ;;  %v654_v44 = vadd.f32 %v622_v38, %v458_v47  ;;  %v624_v7 = vmul.f32 %v2463_v32, %v545_v17  ;;  %v270_v38 = vmul.f32 %v2456_v23, %v3313_v16  ;;  %v1074_v17 = vmax.f32 %v2866_v46, 0.0 }
 0x1da   :  { %v1294_v12 = vmul.f32 %v1165_v37, %v3114_v45  ;;  %v1324_v18 = vadd.f32 %v1323_v61, %v2535_v42  ;;  %v3311_v37 = vld [vmem:[#allocation43_spill] sm:$0xff]  ;;  %v3312_v42 = vld [vmem:[#allocation90_spill] sm:$0xff]  ;;  %v2881_v51 = vadd.f32 %v1012_v27, %v848_v62 }
 0x1db   :  { %v460_v45 = vadd.f32 %v3311_v37, %v268_v36  ;;  %v818_v61 = vmul.f32 %v2470_v14, %v3312_v42  ;;  %v1014_v37 = vmul.f32 %v2483_v19, %v3314_v28  ;;  %v3318_v28 = vld [vmem:[#allocation47_spill] sm:$0xff] }
 0x1dc   :  { %v1325_v48 = vadd.f32 %v1324_v18, %v1294_v12  ;;  %v553_v60 = vpop.permute.xlu0 %552 }
 0x1dd   :  { %v1175_v59 = vpop.permute.xlu1 %1174  ;;  %v850_v21 = vadd.f32 %v818_v61, %v654_v44  ;;  %v656_v12 = vadd.f32 %v624_v7, %v460_v45  ;;  %v626_v18 = vmul.f32 %v2463_v32, %v553_v60  ;;  %v3317_v44 = vld [vmem:[#allocation15_spill] sm:$0xff]  ;;  %v3117_v60 = vmax.f32 %v2881_v51, 0.0 }
 0x1de   :  { %v1296_v25 = vmul.f32 %v1175_v59, %v3115_v56  ;;  %v1326_v47 = vadd.f32 %v1325_v48, %v2554_v10  ;;  %v3315_v59 = vld [vmem:[#allocation45_spill] sm:$0xff]  ;;  %v3316_v10 = vld [vmem:[#allocation92_spill] sm:$0xff]  ;;  %v272_v45 = vmul.f32 %v2456_v23, %v3317_v44 }
 0x1df   :  { %v462_v56 = vadd.f32 %v3315_v59, %v270_v38  ;;  %v820_v48 = vmul.f32 %v2470_v14, %v3316_v10  ;;  %v2896_v38 = vadd.f32 %v1014_v37, %v850_v21 }
 0x1e0   :  { %v1327_v1 = vadd.f32 %v1326_v47, %v1296_v25  ;;  %v561_v36 = vpop.permute.xlu0 %560  ;;  %v464_v59 = vadd.f32 %v3318_v28, %v272_v45  ;;  %v3322_v45 = vld [vmem:[#allocation49_spill] sm:$0xff] }
 0x1e1   :  { %v1185_v42 = vpop.permute.xlu1 %1184  ;;  %v628_v7 = vmul.f32 %v2463_v32, %v561_v36  ;;  %v852_v27 = vadd.f32 %v820_v48, %v656_v12  ;;  %v658_v61 = vadd.f32 %v626_v18, %v462_v56  ;;  %v3321_v12 = vld [vmem:[#allocation17_spill] sm:$0xff]  ;;  %v3353_v46 = vmax.f32 %v2896_v38, 0.0 }
 0x1e2   :  { %v1298_v16 = vmul.f32 %v1185_v42, %v1074_v17  ;;  %v1328_v62 = vadd.f32 %v1327_v1, %v2574_v31  ;;  %v1016_v42 = vmul.f32 %v2483_v19, %v3319_v30  ;;  %v3320_v31 = vld [vmem:[#allocation94_spill] sm:$0xff]  ;;  %v274_v56 = vmul.f32 %v2456_v23, %v3321_v12 }
 0x1e3   :  { %v822_v1 = vmul.f32 %v2470_v14, %v3320_v31  ;;  %v660_v18 = vadd.f32 %v628_v7, %v464_v59  ;;  %v3323_v31 = vld [vmem:[#allocation96_spill] sm:$0xff] }
 0x1e4   :  { %v1329_v25 = vadd.f32 %v1328_v62, %v1298_v16  ;;  %v569_v47 = vpop.permute.xlu0 %568  ;;  %v3118_v62 = vmax.f32 %v2896_v38, 0.0  ;;  %v2910_v30 = vadd.f32 %v1016_v42, %v852_v27  ;;  %v466_v28 = vadd.f32 %v3322_v45, %v274_v56  ;;  %v3326_v45 = vld [vmem:[#allocation46_spill] sm:$0xff] }
 0x1e5   :  { %v1195_v10 = vpop.permute.xlu1 %1194  ;;  %v630_v21 = vmul.f32 %v2463_v32, %v569_v47  ;;  %v854_v37 = vadd.f32 %v822_v1, %v658_v61  ;;  %v3325_v47 = vld [vmem:[#allocation19_spill] sm:$0xff] }
 0x1e6   :  { %v1300_v36 = vmul.f32 %v1195_v10, %v3117_v60  ;;  %v1330_v44 = vadd.f32 %v1329_v25, %v2594_v33  ;;  %v824_v10 = vmul.f32 %v2470_v14, %v3323_v31  ;;  %v3324_v33 = vld [vmem:[#allocation44_spill] sm:$0xff]  ;;  %v276_v59 = vmul.f32 %v2456_v23, %v3325_v47 }
 0x1e7   :  { %v1018_v25 = vmul.f32 %v2483_v19, %v3324_v33  ;;  %v662_v27 = vadd.f32 %v630_v21, %v466_v28  ;;  %v3119_v12 = vmax.f32 %v2910_v30, 0.0  ;;  %v1020_v31 = vmul.f32 %v2483_v19, %v3326_v45  ;;  %v3327_v33 = vld [vmem:[#allocation98_spill] sm:$0xff] }
 0x1e8   :  { %v1331_v48 = vadd.f32 %v1330_v44, %v1300_v36  ;;  %v577_v16 = vpop.permute.xlu0 %576  ;;  %v856_v1 = vadd.f32 %v824_v10, %v660_v18 }
 0x1e9   :  { %v1205_v60 = vpop.permute.xlu1 %1204  ;;  %v632_v42 = vmul.f32 %v2463_v32, %v577_v16  ;;  %v2924_v56 = vadd.f32 %v1018_v25, %v854_v37  ;;  %v3329_v16 = vld [vmem:[#allocation21_spill] sm:$0xff] }
 0x1ea   :  { %v1302_v7 = vmul.f32 %v1205_v60, %v3118_v62  ;;  %v1332_v61 = vadd.f32 %v1331_v48, %v2614_v24  ;;  %v826_v60 = vmul.f32 %v2470_v14, %v3327_v33  ;;  %v3328_v48 = vld [vmem:[#allocation51_spill] sm:$0xff]  ;;  %v278_v28 = vmul.f32 %v2456_v23, %v3329_v16  ;;  %v3330_v33 = vld [vmem:[#allocation48_spill] sm:$0xff] }
 0x1eb   :  { %v468_v62 = vadd.f32 %v3328_v48, %v276_v59  ;;  %v2936_v37 = vadd.f32 %v1020_v31, %v856_v1  ;;  %v1082_v45 = vmax.f32 %v2924_v56, 0.0  ;;  %v1022_v59 = vmul.f32 %v2483_v19, %v3330_v33  ;;  %v3334_v33 = vld [vmem:[#allocation50_spill] sm:$0xff] }
 0x1ec   :  { %v1333_v36 = vadd.f32 %v1332_v61, %v1302_v7  ;;  %v585_v44 = vpop.permute.xlu0 %584  ;;  %v858_v10 = vadd.f32 %v826_v60, %v662_v27  ;;  %v3333_v27 = vld [vmem:[#allocation23_spill] sm:$0xff]  ;;  %v3360_v56 = vmax.f32 %v2692_v13, 0.0 }
 0x1ed   :  { %v1215_v24 = vpop.permute.xlu1 %1214  ;;  %v664_v25 = vadd.f32 %v632_v42, %v468_v62  ;;  %v634_v7 = vmul.f32 %v2463_v32, %v585_v44  ;;  %v280_v42 = vmul.f32 %v2456_v23, %v3333_v27  ;;  %v3120_v44 = vmax.f32 %v2936_v37, 0.0 }
 0x1ee   :  { %v1304_v18 = vmul.f32 %v1215_v24, %v3119_v12  ;;  %v1334_v21 = vadd.f32 %v1333_v36, %v2634_v11  ;;  %v3331_v24 = vld [vmem:[#allocation53_spill] sm:$0xff]  ;;  %v3332_v11 = vld [vmem:[#allocation100_spill] sm:$0xff]  ;;  %v2951_v31 = vadd.f32 %v1022_v59, %v858_v10 }
 0x1ef   :  { %v470_v12 = vadd.f32 %v3331_v24, %v278_v28  ;;  %v828_v36 = vmul.f32 %v2470_v14, %v3332_v11  ;;  %v1024_v24 = vmul.f32 %v2483_v19, %v3334_v33  ;;  %v3335_v11 = vld [vmem:[#allocation55_spill] sm:$0xff]  ;;  %v3337_v33 = vld [vmem:[#allocation52_spill] sm:$0xff] }
 0x1f0   :  { %v1335_v61 = vadd.f32 %v1334_v21, %v1304_v18  ;;  %v593_v47 = vpop.permute.xlu0 %592 }
 0x1f1   :  { %v1225_v48 = vpop.permute.xlu1 %1224  ;;  %v860_v60 = vadd.f32 %v828_v36, %v664_v25  ;;  %v666_v18 = vadd.f32 %v634_v7, %v470_v12  ;;  %v636_v21 = vmul.f32 %v2463_v32, %v593_v47  ;;  %v1086_v12 = vmax.f32 %v2951_v31, 0.0 }
 0x1f2   :  { %v1306_v1 = vmul.f32 %v1225_v48, %v1082_v45  ;;  %v1336_v62 = vadd.f32 %v1335_v61, %v2659_v0  ;;  %v472_v0 = vadd.f32 %v3335_v11, %v280_v42  ;;  %v3336_v61 = vld [vmem:[#allocation102_spill] sm:$0xff]  ;;  %v1026_v42 = vmul.f32 %v2483_v19, %v3337_v33  ;;  %v3338_v11 = vld [vmem:[#allocation105_spill] sm:$0xff] }
 0x1f3   :  { %v830_v27 = vmul.f32 %v2470_v14, %v3336_v61  ;;  %v832_v61 = vmul.f32 %v2470_v14, %v3338_v11  ;;  %v3364_v31 = vmax.f32 %v2745_v52, 0.0  ;;  %v1093_v52 = vmax.f32 %v2788_v9, 0.0 }
 0x1f4   :  { %v1337_v16 = vadd.f32 %v1336_v62, %v1306_v1  ;;  %v2954_v28 = vpop.permute.xlu0 %600  ;;  %v668_v47 = vadd.f32 %v636_v21, %v472_v0  ;;  %v2965_v1 = vadd.f32 %v1024_v24, %v860_v60  ;;  %v3339_v24 = vld [vmem:[#allocation54_spill] sm:$0xff] }
 0x1f5   :  { %v1235_v48 = vpop.permute.xlu1 %1234  ;;  %v862_v7 = vadd.f32 %v830_v27, %v666_v18  ;;  %v1028_v27 = vmul.f32 %v2483_v19, %v3339_v24 }
 0x1f6   :  { %v1308_v10 = vmul.f32 %v1235_v48, %v3120_v44  ;;  %v1338_v25 = vadd.f32 %v1337_v16, %v2690_v5  ;;  %v864_v16 = vadd.f32 %v832_v61, %v668_v47  ;;  %v1088_v21 = vmax.f32 %v2965_v1, 0.0 }
 0x1f7   :  { %v2975_v0 = vadd.f32 %v1026_v42, %v862_v7  ;;  %v3367_v1 = vmax.f32 %v2767_v22, 0.0 }
 0x1f8   :  { %v1339_v59 = vadd.f32 %v1338_v25, %v1308_v10  ;;  %v1365_v36 = vpop.permute.xlu0 %1364  ;;  %v2983_v47 = vadd.f32 %v1028_v27, %v864_v16 }
 0x1f9   :  { %v1245_v62 = vpop.permute.xlu1 %1244 }
 0x1fa   :  { %v1310_v48 = vmul.f32 %v1245_v62, %v1086_v12  ;;  %v1340_v5 = vadd.f32 %v1339_v59, %v2717_v40  ;;  %v3121_v40 = vmax.f32 %v2975_v0, 0.0 }
 0x1fc   :  { %v1341_v44 = vadd.f32 %v1340_v5, %v1310_v48  ;;  %v1377_v18 = vpop.permute.xlu0 %1376  ;;  %v3122_v48 = vmax.f32 %v2983_v47, 0.0 }
 0x1fd   :  { %v1255_v60 = vpop.permute.xlu1 %1254 }
 0x1fe   :  { %v1312_v10 = vmul.f32 %v1255_v60, %v1088_v21  ;;  %v1342_v25 = vadd.f32 %v1341_v44, %v2742_v49 }
 0x200   :  { %v1343_v33 = vadd.f32 %v1342_v25, %v1312_v10  ;;  %v1385_v62 = vpop.permute.xlu0 %1384 }
 0x201   :  { %v1265_v59 = vpop.permute.xlu1 %1264 }
 0x202   :  { %v1314_v7 = vmul.f32 %v1265_v59, %v3121_v40  ;;  %v1344_v42 = vadd.f32 %v1343_v33, %v2765_v58  ;;  %v3340_v58 = vmax.f32 %v2773_v53, 0.0 }
 0x204   :  { %v1345_v11 = vadd.f32 %v1344_v42, %v1314_v7  ;;  %v1393_v61 = vpop.permute.xlu0 %1392  ;;  %v1491_v25 = vmul.f32 %v1365_v36, %v3340_v58  ;;  %v3341_v7 = vmax.f32 %v2781_v8, 0.0 }
 0x205   :  { %v1275_v5 = vpop.permute.xlu1 %1274 }
 0x206   :  { %v1316_v49 = vmul.f32 %v1275_v5, %v3122_v48  ;;  %v1346_v44 = vadd.f32 %v1345_v11, %v2786_v50  ;;  %v3342_v5 = vmax.f32 %v2809_v35, 0.0  ;;  %v3346_v35 = vmax.f32 %v2840_v15, 0.0 }
 0x208   :  { %v2992_v60 = vadd.f32 %v1346_v44, %v1316_v49  ;;  %v1401_v16 = vpop.permute.xlu0 %1400  ;;  %v1494_v50 = vmul.f32 %v1377_v18, %v3342_v5  ;;  %v3343_v44 = vmax.f32 %v2499_v3, 0.0  ;;  %v1498_v18 = vmul.f32 %v1393_v61, %v3346_v35 }
 0x209   :  { %v3347_v3 = vmax.f32 %v2537_v39, 0.0  ;;  %v3350_v39 = vmax.f32 %v2576_v4, 0.0 }
 0x20a   :  { %v1369_v24 = vpop.permute.xlu1 %1368 }
 0x20b   :  { %v1492_v27 = vmul.f32 %v1369_v24, %v1064_v41  ;;  %v3344_v24 = vmax.f32 %v2827_v43, 0.0  ;;  %v3348_v43 = vmax.f32 %v2854_v57, 0.0 }
 0x20c   :  { %v1409_v10 = vpop.permute.xlu0 %1408 }
 0x20d   :  { %v1523_v59 = vadd.f32 %v1492_v27, %v1491_v25  ;;  %v1496_v53 = vmul.f32 %v1385_v62, %v3344_v24  ;;  %v3345_v27 = vmax.f32 %v2518_v54, 0.0  ;;  %v1500_v62 = vmul.f32 %v1401_v16, %v3348_v43 }
 0x20e   :  { %v1373_v33 = vpop.permute.xlu1 %1372  ;;  %v3349_v54 = vmax.f32 %v2556_v6, 0.0  ;;  %v1502_v15 = vmul.f32 %v1409_v10, %v1074_v17 }
 0x20f   :  { %v1493_v42 = vmul.f32 %v1373_v33, %v3341_v7 }
 0x210   :  { %v1417_v40 = vpop.permute.xlu0 %1416 }
 0x211   :  { %v1524_v11 = vadd.f32 %v1523_v59, %v1493_v42 }
 0x212   :  { %v1381_v49 = vpop.permute.xlu1 %1380 }
 0x213   :  { %v1495_v48 = vmul.f32 %v1381_v49, %v3343_v44  ;;  %v1525_v63 = vadd.f32 %v1524_v11, %v1494_v50 }
 0x214   :  { %v1425_v41 = vpop.permute.xlu0 %1424 }
 0x215   :  { %v1526_v36 = vadd.f32 %v1525_v63, %v1495_v48  ;;  %v1506_v17 = vmul.f32 %v1425_v41, %v3353_v46  ;;  %v3365_v46 = vld [vmem:[#allocation56_spill] sm:$0xff] }
 0x216   :  { %v1389_v58 = vpop.permute.xlu1 %1388 }
 0x217   :  { %v1497_v8 = vmul.f32 %v1389_v58, %v3345_v27  ;;  %v1527_v25 = vadd.f32 %v1526_v36, %v1496_v53  ;;  %v3351_v58 = vmax.f32 %v2881_v51, 0.0 }
 0x218   :  { %v1433_v33 = vpop.permute.xlu0 %1432 }
 0x219   :  { %v1528_v59 = vadd.f32 %v1527_v25, %v1497_v8  ;;  %v1504_v57 = vmul.f32 %v1417_v40, %v3351_v58  ;;  %v3352_v8 = vmax.f32 %v2596_v2, 0.0  ;;  %v3356_v2 = vmax.f32 %v2636_v20, 0.0 }
 0x21a   :  { %v1397_v7 = vpop.permute.xlu1 %1396 }
 0x21b   :  { %v1499_v42 = vmul.f32 %v1397_v7, %v3347_v3  ;;  %v1529_v5 = vadd.f32 %v1528_v59, %v1498_v18  ;;  %v3354_v59 = vmax.f32 %v2616_v29, 0.0  ;;  %v3355_v3 = vmax.f32 %v2910_v30, 0.0 }
 0x21c   :  { %v1441_v50 = vpop.permute.xlu0 %1440  ;;  %v3358_v30 = vmax.f32 %v2936_v37, 0.0 }
 0x21d   :  { %v1530_v48 = vadd.f32 %v1529_v5, %v1499_v42  ;;  %v1508_v51 = vmul.f32 %v1433_v33, %v3355_v3  ;;  %v1510_v38 = vmul.f32 %v1441_v50, %v1082_v45 }
 0x21e   :  { %v1405_v11 = vpop.permute.xlu1 %1404 }
 0x21f   :  { %v1501_v49 = vmul.f32 %v1405_v11, %v3349_v54  ;;  %v1531_v44 = vadd.f32 %v1530_v48, %v1500_v62  ;;  %v3357_v11 = vmax.f32 %v2661_v34, 0.0 }
 0x220   :  { %v1449_v63 = vpop.permute.xlu0 %1448 }
 0x221   :  { %v1532_v61 = vadd.f32 %v1531_v44, %v1501_v49  ;;  %v1512_v33 = vmul.f32 %v1449_v63, %v3358_v30 }
 0x222   :  { %v1413_v24 = vpop.permute.xlu1 %1412 }
 0x223   :  { %v1503_v53 = vmul.f32 %v1413_v24, %v3350_v39  ;;  %v1533_v36 = vadd.f32 %v1532_v61, %v1502_v15  ;;  %v3359_v61 = vld [vmem:[#allocation25_spill] sm:$0xff]  ;;  %v638_v24 = vmul.f32 %v2463_v32, %v2954_v28 }
 0x224   :  { %v1457_v35 = vpop.permute.xlu0 %1456  ;;  %v282_v20 = vmul.f32 %v2456_v23, %v3359_v61  ;;  %v3361_v39 = vld [vmem:[#allocation57_spill] sm:$0xff] }
 0x225   :  { %v1534_v16 = vadd.f32 %v1533_v36, %v1503_v53  ;;  %v1514_v53 = vmul.f32 %v1457_v35, %v1086_v12 }
 0x226   :  { %v1421_v27 = vpop.permute.xlu1 %1420  ;;  %v474_v34 = vadd.f32 %v3361_v39, %v282_v20 }
 0x227   :  { %v1505_v6 = vmul.f32 %v1421_v27, %v3352_v8  ;;  %v1535_v25 = vadd.f32 %v1534_v16, %v1504_v57  ;;  %v3362_v57 = vmax.f32 %v2719_v26, 0.0  ;;  %v3363_v27 = vld [vmem:[#allocation107_spill] sm:$0xff]  ;;  %v3366_v26 = vmax.f32 %v2975_v0, 0.0 }
 0x228   :  { %v1465_v42 = vpop.permute.xlu0 %1464  ;;  %v670_v58 = vadd.f32 %v638_v24, %v474_v34  ;;  %v834_v32 = vmul.f32 %v2470_v14, %v3363_v27 }
 0x229   :  { %v1536_v10 = vadd.f32 %v1535_v25, %v1505_v6  ;;  %v1516_v13 = vmul.f32 %v1465_v42, %v1088_v21 }
 0x22a   :  { %v1429_v18 = vpop.permute.xlu1 %1428  ;;  %v866_v6 = vadd.f32 %v834_v32, %v670_v58 }
 0x22b   :  { %v1507_v4 = vmul.f32 %v1429_v18, %v3354_v59  ;;  %v1537_v7 = vadd.f32 %v1536_v10, %v1506_v17  ;;  %v1030_v17 = vmul.f32 %v2483_v19, %v3365_v46 }
 0x22c   :  { %v1473_v49 = vpop.permute.xlu0 %1472 }
 0x22d   :  { %v1538_v40 = vadd.f32 %v1537_v7, %v1507_v4  ;;  %v1518_v10 = vmul.f32 %v1473_v49, %v3366_v26  ;;  %v1062_v14 = vadd.f32 %v1030_v17, %v866_v6  ;;  %v3368_v7 = vmax.f32 %v2983_v47, 0.0 }
 0x22e   :  { %v1437_v5 = vpop.permute.xlu1 %1436 }
 0x22f   :  { %v1509_v43 = vmul.f32 %v1437_v5, %v3356_v2  ;;  %v1539_v62 = vadd.f32 %v1538_v40, %v1508_v51  ;;  %v1094_v5 = vmax.f32 %v1062_v14, 0.0 }
 0x230   :  { %v1481_v37 = vpop.permute.xlu0 %1480 }
 0x231   :  { %v1540_v41 = vadd.f32 %v1539_v62, %v1509_v43  ;;  %v1520_v3 = vmul.f32 %v1481_v37, %v3368_v7 }
 0x232   :  { %v1445_v48 = vpop.permute.xlu1 %1444 }
 0x233   :  { %v1511_v29 = vmul.f32 %v1445_v48, %v3357_v11  ;;  %v1541_v54 = vadd.f32 %v1540_v41, %v1510_v38 }
 0x234   :  { %v1485_v35 = vpop.permute.xlu0 %1484 }
 0x235   :  { %v1542_v44 = vadd.f32 %v1541_v54, %v1511_v29  ;;  %v1521_v42 = vmul.f32 %v1485_v35, %v1093_v52 }
 0x236   :  { %v1453_v15 = vpop.permute.xlu1 %1452 }
 0x237   :  { %v1513_v45 = vmul.f32 %v1453_v15, %v3360_v56  ;;  %v1543_v50 = vadd.f32 %v1542_v44, %v1512_v33 }
 0x238   :  { %v1489_v40 = vpop.permute.xlu0 %1488 }
 0x239   :  { %v1544_v36 = vadd.f32 %v1543_v50, %v1513_v45  ;;  %v1522_v43 = vmul.f32 %v1489_v40, %v1094_v5 }
 0x23a   :  { %v1461_v63 = vpop.permute.xlu1 %1460 }
 0x23b   :  { %v1515_v16 = vmul.f32 %v1461_v63, %v3362_v57  ;;  %v1545_v23 = vadd.f32 %v1544_v36, %v1514_v53 }
 0x23d   :  { %v1546_v28 = vadd.f32 %v1545_v23, %v1515_v16  ;;  %v1564_v61 = vpop.permute.xlu0 %1563 }
 0x23e   :  { %v1469_v8 = vpop.permute.xlu1 %1468 }
 0x23f   :  { %v1517_v12 = vmul.f32 %v1469_v8, %v3364_v31  ;;  %v1547_v25 = vadd.f32 %v1546_v28, %v1516_v13 }
 0x241   :  { %v1548_v18 = vadd.f32 %v1547_v25, %v1517_v12 }
 0x242   :  { %v1477_v59 = vpop.permute.xlu1 %1476 }
 0x243   :  { %v1519_v21 = vmul.f32 %v1477_v59, %v3367_v1  ;;  %v1549_v4 = vadd.f32 %v1548_v18, %v1518_v10 }
 0x245   :  { %v1550_v51 = vadd.f32 %v1549_v4, %v1519_v21 }
 0x247   :  { %v1551_v19 = vadd.f32 %v1550_v51, %v1520_v3  ;;  %v1280_v2 = vpop.permute.xlu1 %1279 }
 0x248   :  { %v1317_v0 = vmul.f32 %v1280_v2, %v1093_v52 }
 0x249   :  { %v1552_v62 = vadd.f32 %v1551_v19, %v1521_v42 }
 0x24a   :  { %v1348_v38 = vadd.f32 %v2992_v60, %v1317_v0 }
 0x24b   :  { %v1285_v41 = vpop.permute.xlu1 %1284  ;;  %v1553_v22 = vadd.f32 %v1552_v62, %v1522_v43 }
 0x24c   :  { %v1318_v48 = vmul.f32 %v1285_v41, %v1094_v5 }
 0x24d   :  { %v1554_v11 = vrot.slane %v1553_v22, 4 }
 0x24e   :  { %v1349_v29 = vadd.f32 %v1348_v38, %v1318_v48 }
 0x24f   :  { %v1555_v47 = vadd.f32 %v1554_v11, %v1553_v22  ;;  %v1360_v50 = vpop.permute.xlu1 %1359 }
 0x250   :  { %v1350_v54 = vrot.slane %v1349_v29, 4 }
 0x251   :  { %v1556_v49 = vrot.slane %v1555_v47, 2 }
 0x252   :  { %v1351_v9 = vadd.f32 %v1350_v54, %v1349_v29 }
 0x253   :  { %v1557_v30 = vadd.f32 %v1556_v49, %v1555_v47 }
 0x254   :  { %v1352_v33 = vrot.slane %v1351_v9, 2 }
 0x255   :  { %v1558_v44 = vrot.slane %v1557_v30, 1 }
 0x256   :  { %v1353_v15 = vadd.f32 %v1352_v33, %v1351_v9 }
 0x257   :  { %v1559_v20 = vadd.f32 %v1558_v44, %v1557_v30 }
 0x258   :  { %v1354_v24 = vrot.slane %v1353_v15, 1 }
 0x259   :  { %v1566_v56 = vadd.f32 %v1564_v61, %v1559_v20 }
 0x25a   :  { %v1355_v45 = vadd.f32 %v1354_v24, %v1353_v15 }
 0x25b   :  { %1568 = vst [vmem:[%s3080_s5 + $0x1] sm:$0x1] %v1566_v56 }
 0x25c   :  { %v1362_v60 = vadd.f32 %v1360_v50, %v1355_v45 }
 0x25e   :  { %1567 = vst [vmem:[%s3080_s5] sm:$0x1] %v1362_v60  ;;  %vm1569_vm0 = vcmp.gt.f32.partialorder %v1566_v56, %v1362_v60 }
 0x25f   :  { %v1570_v39 = vsel %vm1569_vm0, 1, %v3273_v55 }
 0x260   :  { %1571 = vst [vmem:[%s3081_s6] sm:$0x1] %v1570_v39 }

</bundles_post_ra>
